<compile_context>
chip_gen: v7x
topology: tpu7x:2x2x1
jax: 0.10.0
libtpu: 0.0.40
codegen_flags: <defaults>
</compile_context>

<pallas_src>
import jax
import jax.numpy as jnp
from jax.experimental import pallas as pl
from jax.experimental.pallas import tpu as pltpu


def mlp_kernel(x_ref, w1_ref, b1_ref, w2_ref, b2_ref, w3_ref, b3_ref, o_ref):
    # Cast the x tile to the MXU compute dtype in-kernel (VPU work hidden
    # under the MXU); avoids a wrapper-side pad/cast pass over x.
    x = x_ref[...].astype(w1_ref.dtype)
    # fc1 + relu  (784 -> 256), f32 accumulate, f32 elementwise, bf16 re-cast
    h1 = jnp.dot(x, w1_ref[...], preferred_element_type=jnp.float32)
    h1 = jnp.maximum(h1 + b1_ref[...], 0.0).astype(w2_ref.dtype)
    # fc2 + relu  (256 -> 128 padded)
    h2 = jnp.dot(h1, w2_ref[...], preferred_element_type=jnp.float32)
    h2 = jnp.maximum(h2 + b2_ref[...], 0.0).astype(w3_ref.dtype)
    # fc3         (128 padded -> 128 padded), no activation
    h3 = jnp.dot(h2, w3_ref[...], preferred_element_type=jnp.float32)
    o_ref[...] = (h3 + b3_ref[...]).astype(o_ref.dtype)


def _round_up(n, m):
    return ((n + m - 1) // m) * m


def prepare_params(w1, b1, w2, b2, w3, b3, compute_dtype=jnp.bfloat16):
    """One-time preprocessing (hoisted out of the per-call path).

    Pads hidden/output feature dims to multiples of 128 (lane-dense matmuls,
    unmasked stores) and casts weights to the MXU compute dtype.  Zero padding
    is semantics-preserving: padded hidden/output columns have zero weights
    and biases, and padded weight rows multiply zero activations.
    Weights are (in, out); biases (1, out).
    """
    def pad2(a, rows, cols):
        return jnp.pad(a, ((0, rows - a.shape[0]), (0, cols - a.shape[1])))

    d_in, d1 = w1.shape            # 784, 256
    d2 = w2.shape[1]               # 64
    d3 = w3.shape[1]               # 10
    d1p = _round_up(d1, 128)       # 256
    d2p = _round_up(d2, 128)       # 128
    d3p = _round_up(d3, 128)       # 128

    w1_p = pad2(w1, d_in, d1p).astype(compute_dtype)   # input dim left unpadded
    w2_p = pad2(w2, d1p, d2p).astype(compute_dtype)
    w3_p = pad2(w3, d2p, d3p).astype(compute_dtype)
    b1_p = pad2(b1, 1, d1p).astype(jnp.float32)
    b2_p = pad2(b2, 1, d2p).astype(jnp.float32)
    b3_p = pad2(b3, 1, d3p).astype(jnp.float32)
    params = (w1_p, b1_p, w2_p, b2_p, w3_p, b3_p)
    return params, d3   # d3 = true number of output classes


def mlp_forward(x, params, out_dim=10, *, tile_m=128):
    """Fused 3-layer MLP forward.

    x: (B, 784), any float dtype (cast to bf16 in-kernel).
    params: output of prepare_params (pre-padded, pre-cast).
    tile_m: batch tile.  Default 128 keeps >=2 grid steps per TensorCore on
    v7x for B>=512; raise to 512-1024 for large batches on v5e/v6e.
    """
    w1_p, b1_p, w2_p, b2_p, w3_p, b3_p = params
    B, D_in = x.shape
    D1 = w1_p.shape[1]
    D2 = w2_p.shape[1]
    D3p = w3_p.shape[1]

    # Shrink tile for tiny batches (multiple of 16 for bf16 sublane packing);
    # pad batch rows only (cheap) when B isn't a tile multiple.
    tile_m = min(tile_m, _round_up(B, 16))
    B_p = _round_up(B, tile_m)
    if B_p != B:
        x = jnp.pad(x, ((0, B_p - B), (0, 0)))

    grid = (B_p // tile_m,)

    out = pl.pallas_call(
        mlp_kernel,
        out_shape=jax.ShapeDtypeStruct((B_p, D3p), jnp.float32),
        grid_spec=pltpu.PrefetchScalarGridSpec(
            num_scalar_prefetch=0,
            grid=grid,
            in_specs=[
                # x tile at native (unpadded) width: last dim == full array dim.
                pl.BlockSpec((tile_m, D_in), lambda i: (i, 0)),
                pl.BlockSpec((D_in, D1), lambda i: (0, 0)),   # w1 (full, resident)
                pl.BlockSpec((1, D1), lambda i: (0, 0)),      # b1
                pl.BlockSpec((D1, D2), lambda i: (0, 0)),     # w2 (full, resident)
                pl.BlockSpec((1, D2), lambda i: (0, 0)),      # b2
                pl.BlockSpec((D2, D3p), lambda i: (0, 0)),    # w3 (full, resident)
                pl.BlockSpec((1, D3p), lambda i: (0, 0)),     # b3
            ],
            out_specs=pl.BlockSpec((tile_m, D3p), lambda i: (i, 0)),
        ),
        compiler_params=pltpu.CompilerParams(
            dimension_semantics=("parallel",),   # batch tiles shard across TCs
        ),
    )(x, w1_p, b1_p, w2_p, b2_p, w3_p, b3_p)

    # Strip batch / output-lane padding.
    return out[:B, :out_dim]


def init_params(key):
    """Deterministic parameter init mimicking nn.Linear shapes.

    PyTorch stores W as (out, in); we generate (out, in) then transpose to
    (in, out) for the kernel's x @ W layout.
    """
    def linear(k, fan_in, fan_out):
        kw, kb = jax.random.split(k)
        bound = 1.0 / jnp.sqrt(fan_in)
        w = jax.random.uniform(kw, (fan_out, fan_in), jnp.float32, -bound, bound)
        b = jax.random.uniform(kb, (fan_out,), jnp.float32, -bound, bound)
        return w.T, b.reshape(1, fan_out)

    k1, k2, k3 = jax.random.split(key, 3)
    w1, b1 = linear(k1, 28 * 28, 256)
    w2, b2 = linear(k2, 256, 64)
    w3, b3 = linear(k3, 64, 10)
    return w1, b1, w2, b2, w3, b3


def reference_forward_f32(x, w1, b1, w2, b2, w3, b3):
    h1 = jnp.maximum(x @ w1 + b1, 0.0)
    h2 = jnp.maximum(h1 @ w2 + b2, 0.0)
    return h2 @ w3 + b3


def reference_forward_bf16(x, w1, b1, w2, b2, w3, b3):
    """Same bf16-input / f32-accumulate math as the kernel (for a tight check)."""
    bf = jnp.bfloat16
    h1 = jnp.dot(x.astype(bf), w1.astype(bf), preferred_element_type=jnp.float32)
    h1 = jnp.maximum(h1 + b1, 0.0).astype(bf)
    h2 = jnp.dot(h1, w2.astype(bf), preferred_element_type=jnp.float32)
    h2 = jnp.maximum(h2 + b2, 0.0).astype(bf)
    h3 = jnp.dot(h2, w3.astype(bf), preferred_element_type=jnp.float32)
    return h3 + b3


if __name__ == "__main__":
    key = jax.random.PRNGKey(0)
    kx, kp = jax.random.split(key)

    # B=512 with tile_m=128 -> 4-step parallel grid (>=2 steps per TensorCore
    # on v7x, so the x-tile DMA pipelines under compute).
    B = 512
    x = jax.random.normal(kx, (B, 28 * 28), jnp.float32)
    raw_params = init_params(kp)

    # One-time weight preprocessing (padding + bf16 cast) hoisted out of the
    # per-call path.
    params, out_dim = prepare_params(*raw_params)

    out = mlp_forward(x, params, out_dim, tile_m=128)
    out = jax.block_until_ready(out)
    assert out.shape == (B, 10)

    # Tight check against a reference that uses the identical bf16/f32 recipe.
    ref_bf16 = reference_forward_bf16(x, *raw_params)
    assert jnp.allclose(out, ref_bf16, atol=1e-2, rtol=1e-2), \
        "mismatch vs bf16-consistent reference"

    # Loose sanity check against full-f32 PyTorch-equivalent semantics.
    ref_f32 = reference_forward_f32(x, *raw_params)
    assert jnp.allclose(out, ref_f32, atol=1e-1, rtol=1e-1), \
        "mismatch vs f32 reference"

    # Ragged small-batch path (tile shrink + row-only padding).
    x_small = x[:3]
    out_small = jax.block_until_ready(mlp_forward(x_small, params, out_dim))
    assert out_small.shape == (3, 10)
    assert jnp.allclose(out_small, ref_bf16[:3], atol=1e-2, rtol=1e-2), \
        "small-batch mismatch vs bf16-consistent reference"

    print("KERNEL_OK")
</pallas_src>

<mosaic_0001>
module attributes {stable_mosaic.version = 11 : i64} {
  func.func @mlp_kernel(%arg0: i32, %arg1: memref<128x784xf32, #tpu.memory_space<vmem>>, %arg2: memref<784x256xbf16, #tpu.memory_space<vmem>>, %arg3: memref<1x256xf32, #tpu.memory_space<vmem>>, %arg4: memref<256x128xbf16, #tpu.memory_space<vmem>>, %arg5: memref<1x128xf32, #tpu.memory_space<vmem>>, %arg6: memref<128x128xbf16, #tpu.memory_space<vmem>>, %arg7: memref<1x128xf32, #tpu.memory_space<vmem>>, %arg8: memref<128x128xf32, #tpu.memory_space<vmem>>) attributes {dimension_semantics = [#tpu.dimension_semantics<parallel>], iteration_bounds = array<i64: 4>, scalar_prefetch = 0 : i64, scratch_operands = 0 : i64, tpu.core_type = #tpu.core_type<tc>, window_params = [{transform_indices = @transform_0, window_bounds = array<i64: 128, 784>}, {pipeline_mode = #tpu.pipeline_mode<synchronous>, transform_indices = @transform_1, window_bounds = array<i64: 784, 256>}, {pipeline_mode = #tpu.pipeline_mode<synchronous>, transform_indices = @transform_2, window_bounds = array<i64: 1, 256>}, {pipeline_mode = #tpu.pipeline_mode<synchronous>, transform_indices = @transform_3, window_bounds = array<i64: 256, 128>}, {pipeline_mode = #tpu.pipeline_mode<synchronous>, transform_indices = @transform_4, window_bounds = array<i64: 1, 128>}, {pipeline_mode = #tpu.pipeline_mode<synchronous>, transform_indices = @transform_5, window_bounds = array<i64: 128, 128>}, {pipeline_mode = #tpu.pipeline_mode<synchronous>, transform_indices = @transform_6, window_bounds = array<i64: 1, 128>}, {transform_indices = @transform_7, window_bounds = array<i64: 128, 128>}]} {
    %c0 = arith.constant 0 : index
    %c0_0 = arith.constant 0 : index
    %0 = vector.load %arg1[%c0, %c0_0] : memref<128x784xf32, #tpu.memory_space<vmem>>, vector<128x784xf32>
    %1 = arith.truncf %0 : vector<128x784xf32> to vector<128x784xbf16>
    %c0_1 = arith.constant 0 : index
    %c0_2 = arith.constant 0 : index
    %2 = vector.load %arg2[%c0_1, %c0_2] : memref<784x256xbf16, #tpu.memory_space<vmem>>, vector<784x256xbf16>
    %cst = arith.constant dense<0.000000e+00> : vector<128x256xf32>
    %3 = tpu.matmul %1, %2, %cst {dimension_numbers = #tpu.dot_dimension_numbers<[1], [0], [0], [1], [0, 0, 1, 1], [], []>} : vector<128x784xbf16>, vector<784x256xbf16>, vector<128x256xf32> -> vector<128x256xf32>
    %c0_3 = arith.constant 0 : index
    %c0_4 = arith.constant 0 : index
    %4 = vector.load %arg3[%c0_3, %c0_4] : memref<1x256xf32, #tpu.memory_space<vmem>>, vector<1x256xf32>
    %5 = vector.broadcast %4 : vector<1x256xf32> to vector<128x256xf32>
    %6 = arith.addf %3, %5 : vector<128x256xf32>
    %cst_5 = arith.constant 0.000000e+00 : f32
    %7 = vector.broadcast %cst_5 : f32 to vector<128x256xf32>
    %8 = arith.maximumf %6, %7 : vector<128x256xf32>
    %9 = arith.truncf %8 : vector<128x256xf32> to vector<128x256xbf16>
    %c0_6 = arith.constant 0 : index
    %c0_7 = arith.constant 0 : index
    %10 = vector.load %arg4[%c0_6, %c0_7] : memref<256x128xbf16, #tpu.memory_space<vmem>>, vector<256x128xbf16>
    %cst_8 = arith.constant dense<0.000000e+00> : vector<128x128xf32>
    %11 = tpu.matmul %9, %10, %cst_8 {dimension_numbers = #tpu.dot_dimension_numbers<[1], [0], [0], [1], [0, 0, 1, 1], [], []>} : vector<128x256xbf16>, vector<256x128xbf16>, vector<128x128xf32> -> vector<128x128xf32>
    %c0_9 = arith.constant 0 : index
    %c0_10 = arith.constant 0 : index
    %12 = vector.load %arg5[%c0_9, %c0_10] : memref<1x128xf32, #tpu.memory_space<vmem>>, vector<1x128xf32>
    %13 = vector.broadcast %12 : vector<1x128xf32> to vector<128x128xf32>
    %14 = arith.addf %11, %13 : vector<128x128xf32>
    %cst_11 = arith.constant 0.000000e+00 : f32
    %15 = vector.broadcast %cst_11 : f32 to vector<128x128xf32>
    %16 = arith.maximumf %14, %15 : vector<128x128xf32>
    %17 = arith.truncf %16 : vector<128x128xf32> to vector<128x128xbf16>
    %c0_12 = arith.constant 0 : index
    %c0_13 = arith.constant 0 : index
    %18 = vector.load %arg6[%c0_12, %c0_13] : memref<128x128xbf16, #tpu.memory_space<vmem>>, vector<128x128xbf16>
    %cst_14 = arith.constant dense<0.000000e+00> : vector<128x128xf32>
    %19 = tpu.matmul %17, %18, %cst_14 {dimension_numbers = #tpu.dot_dimension_numbers<[1], [0], [0], [1], [0, 0, 1, 1], [], []>} : vector<128x128xbf16>, vector<128x128xbf16>, vector<128x128xf32> -> vector<128x128xf32>
    %c0_15 = arith.constant 0 : index
    %c0_16 = arith.constant 0 : index
    %20 = vector.load %arg7[%c0_15, %c0_16] : memref<1x128xf32, #tpu.memory_space<vmem>>, vector<1x128xf32>
    %21 = vector.broadcast %20 : vector<1x128xf32> to vector<128x128xf32>
    %22 = arith.addf %19, %21 : vector<128x128xf32>
    %c0_17 = arith.constant 0 : index
    %c0_18 = arith.constant 0 : index
    %23 = vector.load %arg8[%c0_17, %c0_18] : memref<128x128xf32, #tpu.memory_space<vmem>>, vector<128x128xf32>
    tpu.vector_store %arg8[%c0_17, %c0_18], %22 {strides = array<i32>} : memref<128x128xf32, #tpu.memory_space<vmem>>, vector<128x128xf32>,
    return
  }
  func.func @transform_0(%arg0: i32) -> (i32, i32) {
    %c0_i32 = arith.constant 0 : i32
    %c0_i32_0 = arith.constant 0 : i32
    return %arg0, %c0_i32 : i32, i32
  }
  func.func @transform_1(%arg0: i32) -> (i32, i32) {
    %c0_i32 = arith.constant 0 : i32
    %c0_i32_0 = arith.constant 0 : i32
    %c0_i32_1 = arith.constant 0 : i32
    return %c0_i32, %c0_i32_0 : i32, i32
  }
  func.func @transform_2(%arg0: i32) -> (i32, i32) {
    %c0_i32 = arith.constant 0 : i32
    %c0_i32_0 = arith.constant 0 : i32
    %c0_i32_1 = arith.constant 0 : i32
    return %c0_i32, %c0_i32_0 : i32, i32
  }
  func.func @transform_3(%arg0: i32) -> (i32, i32) {
    %c0_i32 = arith.constant 0 : i32
    %c0_i32_0 = arith.constant 0 : i32
    %c0_i32_1 = arith.constant 0 : i32
    return %c0_i32, %c0_i32_0 : i32, i32
  }
  func.func @transform_4(%arg0: i32) -> (i32, i32) {
    %c0_i32 = arith.constant 0 : i32
    %c0_i32_0 = arith.constant 0 : i32
    %c0_i32_1 = arith.constant 0 : i32
    return %c0_i32, %c0_i32_0 : i32, i32
  }
  func.func @transform_5(%arg0: i32) -> (i32, i32) {
    %c0_i32 = arith.constant 0 : i32
    %c0_i32_0 = arith.constant 0 : i32
    %c0_i32_1 = arith.constant 0 : i32
    return %c0_i32, %c0_i32_0 : i32, i32
  }
  func.func @transform_6(%arg0: i32) -> (i32, i32) {
    %c0_i32 = arith.constant 0 : i32
    %c0_i32_0 = arith.constant 0 : i32
    %c0_i32_1 = arith.constant 0 : i32
    return %c0_i32, %c0_i32_0 : i32, i32
  }
  func.func @transform_7(%arg0: i32) -> (i32, i32) {
    %c0_i32 = arith.constant 0 : i32
    %c0_i32_0 = arith.constant 0 : i32
    return %arg0, %c0_i32 : i32, i32
  }
}

</mosaic_0001>

<bundles_post_ra>
// kernel: tpu_custom_call.1
= control target key start
LH: loop header
LB: loop body
LE: loop exit
PB: predicated region body
PF: predicated region fallthrough
CT: control target
= control target key end

     0   :  { %12 = vsyncpa [#allocation3], 0  ;;  %s3552_s0 = inlined_call_operand.vmem [shape: f32[512,784], index: 0, kind: input, shape index: {}]   ;;  %s3553_s1 = inlined_call_operand.vmem [shape: bf16[784,256], index: 1, kind: input, shape index: {}]   ;;  %s3554_s2 = inlined_call_operand.vmem [shape: f32[1,256], index: 2, kind: input, shape index: {}]   ;;  %s3555_s3 = inlined_call_operand.vmem [shape: bf16[256,128], index: 3, kind: input, shape index: {}]   ;;  %s3556_s4 = inlined_call_operand.vmem [shape: f32[1,128], index: 4, kind: input, shape index: {}]   ;;  %s3557_s5 = inlined_call_operand.vmem [shape: bf16[128,128], index: 5, kind: input, shape index: {}]   ;;  %s3558_s6 = inlined_call_operand.vmem [shape: f32[1,128], index: 6, kind: input, shape index: {}]   ;;  %s3559_s7 = inlined_call_operand.hbm [shape: f32[512,128], index: 7, kind: output, shape index: {}]  }
   0x1   :  { %14 = vsyncpa [#allocation3 + $0x1], 0  ;;  %s2800_s24 = smov 0   ;;  %s2802_s25 = smov 0  }
   0x2   :  { %s2804_s26 = smov 0   ;;  %s2806_s27 = smov 0  }
   0x3 LB: > { %s2821_s28 = sadd.s32 4294967295, %s2754_s27   ;;  %s2093_s29 = sadd.s32 4294967294, %s2754_s27   ;;  %s2754_s27 = sphi %s2806_s27, %s3565_s27   ;;  %s2750_s26 = sphi %s2804_s26, %s3564_s26   ;;  %s2746_s25 = sphi %s2802_s25, %s3563_s25   ;;  %s2742_s24 = sphi %s2800_s24, %s3562_s24  }
   0x4   : > { %s2825_s30 = sadd.s32 1, %s2754_s27   ;;  %s179_s8 = sadd.s32 1, %s2750_s26 }
   0x5   : > { %s176_s9 = ssub.s32 %s2754_s27, %s2825_s30  ;;  %p189_p0 = scmp.ne.s32.totalorder %s2750_s26, %s2746_s25 }
   0x6   : > { %p177_p1 = scmp.eq.s32.totalorder %s176_s9, 0  ;;  %p190_p2 = scmp.eq.s32.totalorder %s2821_s28, 3 }
   0x7   : > { %p195_p3 = scmp.ne.s32.totalorder %s2746_s25, %s2742_s24  ;;  %p196_p4 = scmp.eq.s32.totalorder %s2093_s29, 3 }
   0x8   : > { %s2836_s10 = scalar_select %p177_p1, %s2750_s26, %s179_s8  }
   0x9   : > { %p2838_p5 = por %p190_p2, %p189_p0  ;;  %p2842_p6 = por %p196_p4, %p195_p3 }
   0xa   : > { %p2096_p7 = scmp.ge.s32.totalorder %s2754_s27, 1  ;;  %p242_p8 = scmp.lt.s32.totalorder %s2754_s27, 5 }
   0xc   : > { %p243_p9 = pnand %p2096_p7, %p242_p8 }
   0xd   : > { %v2521_v0 = vld [vmem:[%s3553_s1 + $0x104] ss:$8 sps:$4 sm:$0xff] (!%p243_p9)   ;;  %v2523_v1 = vld [vmem:[%s3553_s1 + $0x100] ss:$8 sps:$4 sm:$0xff] (!%p243_p9)   ;;  %v2524_v2 = vld [vmem:[%s3553_s1 + $0x114] ss:$8 sps:$4 sm:$0xff] (!%p243_p9)  }
   0xe   : > { %246 = sbr.rel (%p243_p9) target bundleno = 939 (0x3ab), region = 48  ;;  %1190 = vmatprep.subr.bf16.mxu0 (!%p243_p9), %v2521_v0  ;;  %v2526_v3 = vld [vmem:[%s3553_s1 + $0x110] ss:$8 sps:$4 sm:$0xff] (!%p243_p9)   ;;  %s2098_s21 = sshll.u32 (!%p243_p9), %s2821_s28, 4  ;;  %v2527_v4 = vld [vmem:[%s3553_s1 + $0x124] ss:$8 sps:$4 sm:$0xff] (!%p243_p9)  }
   0xf   : > { %1191 = vmatpush1.bf16.msra.mxu0 (!%p243_p9), %v2523_v1  ;;  %p276_p10 = scmp.lt.s32.totalorder (!%p243_p9), %s2098_s21, 63  ;;  %v2529_v5 = vld [vmem:[%s3553_s1 + $0x120] ss:$8 sps:$4 sm:$0xff] (!%p243_p9)   ;;  %v2530_v6 = vld [vmem:[%s3553_s1 + $0x134] ss:$8 sps:$4 sm:$0xff] (!%p243_p9)   ;;  %vm1052_vm0 = vcmask (!%p243_p9), 130048  }
  0x10   : > { %1192 = vmatprep.subr.bf16.mxu0 (!%p243_p9), %v2524_v2  ;;  %v2532_v7 = vld [vmem:[%s3553_s1 + $0x130] ss:$8 sps:$4 sm:$0xff] (!%p243_p9)   ;;  %v2533_v8 = vld [vmem:[%s3553_s1 + $0x144] ss:$8 sps:$4 sm:$0xff] (!%p243_p9)   ;;  %v2535_v9 = vld [vmem:[%s3553_s1 + $0x140] ss:$8 sps:$4 sm:$0xff] (!%p243_p9)  }
  0x11   : > { %v2536_v10 = vld [vmem:[%s3553_s1 + $0x154] ss:$8 sps:$4 sm:$0xff] (!%p243_p9)   ;;  %v2538_v11 = vld [vmem:[%s3553_s1 + $0x150] ss:$8 sps:$4 sm:$0xff] (!%p243_p9)   ;;  %v2539_v12 = vld [vmem:[%s3553_s1 + $0x164] ss:$8 sps:$4 sm:$0xff] (!%p243_p9)  }
  0x12   : > { %v2541_v16 = vld [vmem:[%s3553_s1 + $0x160] ss:$8 sps:$4 sm:$0xff] (!%p243_p9)   ;;  %v2542_v17 = vld [vmem:[%s3553_s1 + $0x174] ss:$8 sps:$4 sm:$0xff] (!%p243_p9)   ;;  %v2544_v18 = vld [vmem:[%s3553_s1 + $0x170] ss:$8 sps:$4 sm:$0xff] (!%p243_p9)  }
  0x13   : > { %1193 = vmatpush1.bf16.msra.mxu0 (!%p243_p9), %v2526_v3  ;;  %v2545_v19 = vld [vmem:[%s3553_s1 + $0x184] ss:$8 sps:$4 sm:$0xff] (!%p243_p9)   ;;  %v2547_v20 = vld [vmem:[%s3553_s1 + $0x180] ss:$8 sps:$4 sm:$0xff] (!%p243_p9)   ;;  %v2548_v21 = vld [vmem:[%s3553_s1 + $0x194] ss:$8 sps:$4 sm:$0xff] (!%p243_p9)  }
  0x14   : > { %1194 = vmatprep.subr.bf16.mxu0 (!%p243_p9), %v2527_v4  ;;  %v2550_v22 = vld [vmem:[%s3553_s1 + $0x190] ss:$8 sps:$4 sm:$0xff] (!%p243_p9)   ;;  %v2551_v23 = vld [vmem:[%s3553_s1 + $0x1a4] ss:$8 sps:$4 sm:$0xff] (!%p243_p9)   ;;  %v2553_v24 = vld [vmem:[%s3553_s1 + $0x1a0] ss:$8 sps:$4 sm:$0xff] (!%p243_p9)  }
  0x15   : > { %s3567_s21 = smov (!%p276_p10, %s2098_s21), 63  ;;  %v2554_v25 = vld [vmem:[%s3553_s1 + $0x1b4] ss:$8 sps:$4 sm:$0xff]   ;;  %v2556_v26 = vld [vmem:[%s3553_s1 + $0x1b0] ss:$8 sps:$4 sm:$0xff]   ;;  %s272_s15 = sand.u32 1, %s2746_s25  }
  0x16   : > { %s2478_s18 = smul.u32 56, %s3567_s21  ;;  %v2557_v27 = vld [vmem:[%s3553_s1 + $0x1c4] ss:$8 sps:$4 sm:$0xff]   ;;  %v2559_v28 = vld [vmem:[%s3553_s1 + $0x1c0] ss:$8 sps:$4 sm:$0xff]   ;;  %s2097_s16 = sshll.u32 %s272_s15, 7 }
  0x17   : > { %1195 = vmatpush1.bf16.msra.mxu0 %v2529_v5  ;;  %v2560_v29 = vld [vmem:[%s3553_s1 + $0x1d4] ss:$8 sps:$4 sm:$0xff]   ;;  %v2562_v30 = vld [vmem:[%s3553_s1 + $0x1d0] ss:$8 sps:$4 sm:$0xff]   ;;  %v2563_v31 = vld [vmem:[%s3553_s1 + $0x1e4] ss:$8 sps:$4 sm:$0xff]  }
  0x18   : > { %1196 = vmatprep.subr.bf16.mxu0 %v2530_v6  ;;  %s2885_s9 = scalar_lea.vmem %s3552_s0, %s2478_s18  ;;  %v2614_v32 = vld [vmem:[%s3553_s1 + $0x4] ss:$8 sps:$4 sm:$0xff]   ;;  %v2619_v33 = vld [vmem:[%s3553_s1] ss:$8 sps:$4 sm:$0xff]   ;;  %v2566_v35 = vld [vmem:[%s3553_s1 + $0x1f4] ss:$8 sps:$4 sm:$0xff]  }
  0x19   : > { %v287_v13 = vld [vmem:[%s2885_s9 + $0x18] sm:$0xff]  ;;  %v294_v14 = vld [vmem:[%s2885_s9 + $0x50] sm:$0xff]  ;;  %1077 = vmatprep.subr.bf16.mxu1 %v2614_v32  ;;  %v2565_v34 = vld [vmem:[%s3553_s1 + $0x1e0] ss:$8 sps:$4 sm:$0xff]   ;;  %s3482_s19 = scalar_lea.vmem [#allocation2], %s2097_s16  ;;  %s2237_s20 = sshll.u32 %s2821_s28, 11 }
  0x1a   : > { %v399_v15 = vpack.c.bf16 %v294_v14, %v287_v13  ;;  %1078 = vmatpush1.bf16.msra.mxu1 %v2619_v33  ;;  %v2620_v36 = vld [vmem:[%s3553_s1 + $0x14] ss:$8 sps:$4 sm:$0xff]   ;;  %v2568_v37 = vld [vmem:[%s3553_s1 + $0x1f0] ss:$8 sps:$4 sm:$0xff]   ;;  %v293_v39 = vld [vmem:[%s2885_s9 + $0x48] sm:$0xff]  ;;  %s2031_s22 = sshll.u32 %s3482_s19, 4  ;;  %s3502_s29 = scalar_lea.hbm %s3559_s7, %s2237_s20  ;;  %s3504_s22 = int_to_ptr.vmem [resolvable:$true] %s2031_s22 }
  0x1b   : > { %1197 = vmatpush1.bf16.msra.mxu0 %v2532_v7  ;;  %v286_v38 = vld [vmem:[%s2885_s9 + $0x10] sm:$0xff]  ;;  %v2571_v40 = vld [vmem:[%s3553_s1 + $0x204] ss:$8 sps:$4 sm:$0xff]   ;;  %1079 = vmatprep.subr.bf16.mxu1 %v2620_v36  ;;  %v2628_v45 = vld [vmem:[%s3553_s1 + $0x20] ss:$8 sps:$4 sm:$0xff]   ;;  %s3511_s28 = scalar_lea.sflag [#allocation3], %s272_s15 }
  0x1c   : > { %1198 = vmatprep.subr.bf16.mxu0 %v2533_v8  ;;  %1222 = vmatprep.mubr.bf16.mxu0 %v399_v15  ;;  %v2625_v41 = vld [vmem:[%s3553_s1 + $0x10] ss:$8 sps:$4 sm:$0xff]   ;;  %v301_v42 = vld [vmem:[%s2885_s9 + $0x88] sm:$0xff]  ;;  %v308_v44 = vld [vmem:[%s2885_s9 + $0xc0] sm:$0xff]  ;;  %v398_v47 = vpack.c.bf16 %v293_v39, %v286_v38  ;;  %s2692_s8 = scalar_lea.vmem %s3504_s22, 2048  ;;  %s2757_s13 = smov [#allocation2]  }
  0x1d   : > { %v2626_v43 = vld [vmem:[%s3553_s1 + $0x24] ss:$8 sps:$4 sm:$0xff]   ;;  %v2629_v46 = vld [vmem:[%s3553_s1 + $0x34] ss:$8 sps:$4 sm:$0xff]   ;;  %v2569_v48 = vld [vmem:[%s3553_s1 + $0x200] ss:$8 sps:$4 sm:$0xff]   ;;  %v406_v49 = vpack.c.bf16 %v308_v44, %v301_v42  ;;  %p2693_p11 = scmp.ne.s32.totalorder %s3504_s22, %s2692_s8 }
  0x1e   : > { %1080 = vmatpush1.bf16.msra.mxu1 %v2625_v41  ;;  %v2574_v50 = vld [vmem:[%s3553_s1 + $0x214] ss:$8 sps:$4 sm:$0xff]   ;;  %v2631_v51 = vld [vmem:[%s3553_s1 + $0x30] ss:$8 sps:$4 sm:$0xff]   ;;  %v2632_v53 = vld [vmem:[%s3553_s1 + $0x44] ss:$8 sps:$4 sm:$0xff]  }
  0x1f   : > { %1199 = vmatpush1.bf16.msra.mxu0 %v2535_v9  ;;  %1081 = vmatprep.subr.bf16.mxu1 %v2626_v43  ;;  %v2572_v52 = vld [vmem:[%s3553_s1 + $0x210] ss:$8 sps:$4 sm:$0xff]   ;;  %v300_v54 = vld [vmem:[%s2885_s9 + $0x80] sm:$0xff]  ;;  %v2635_v60 = vld [vmem:[%s3553_s1 + $0x54] ss:$8 sps:$4 sm:$0xff]   ;;  %p2694_p12 = pnand %p2693_p11, %p2838_p5  ;;  %s2696_s21 = sshll.u32 %s2757_s13, 4  ;;  %s2697_s21 = int_to_ptr.vmem [resolvable:$false] %s2696_s21 }
  0x20   : > { %1200 = vmatprep.subr.bf16.mxu0 %v2536_v10  ;;  %v307_v55 = vld [vmem:[%s2885_s9 + $0xb8] sm:$0xff]  ;;  %v2577_v56 = vld [vmem:[%s3553_s1 + $0x224] ss:$8 sps:$4 sm:$0xff]   ;;  %v322_v58 = vld [vmem:[%s2885_s9 + $0x130] sm:$0xff]  ;;  %s2698_s14 = scalar_lea.vmem %s2697_s21, 4096  ;;  %p2699_p0 = scmp.lt.s32.totalorder %s3504_s22, %s2697_s21 }
  0x21   : > { %v315_v57 = vld [vmem:[%s2885_s9 + $0xf8] sm:$0xff]  ;;  %v2634_v59 = vld [vmem:[%s3553_s1 + $0x40] ss:$8 sps:$4 sm:$0xff]   ;;  %v405_v61 = vpack.c.bf16 %v307_v55, %v300_v54  ;;  %v2638_v3 = vld [vmem:[%s3553_s1 + $0x64] ss:$8 sps:$4 sm:$0xff]   ;;  %p2695_p13 = pneg %p2694_p12  ;;  %p2700_p1 = scmp.lt.s32.totalorder %s2698_s14, %s2692_s8 }
  0x22   : > { %1082 = vmatpush1.bf16.msra.mxu1 %v2628_v45  ;;  %v2575_v62 = vld [vmem:[%s3553_s1 + $0x220] ss:$8 sps:$4 sm:$0xff]   ;;  %v413_v63 = vpack.c.bf16 %v322_v58, %v315_v57  ;;  %v2580_v0 = vld [vmem:[%s3553_s1 + $0x234] ss:$8 sps:$4 sm:$0xff]   ;;  %v2637_v1 = vld [vmem:[%s3553_s1 + $0x50] ss:$8 sps:$4 sm:$0xff]  }
  0x23   : > { %1201 = vmatpush1.bf16.msra.mxu0 %v2538_v11  ;;  %1083 = vmatprep.subr.bf16.mxu1 %v2629_v46  ;;  %v2578_v2 = vld [vmem:[%s3553_s1 + $0x230] ss:$8 sps:$4 sm:$0xff]   ;;  %v321_v5 = vld [vmem:[%s2885_s9 + $0x128] sm:$0xff]  ;;  %v336_v8 = vld [vmem:[%s2885_s9 + $0x1a0] sm:$0xff]  ;;  %p2701_p2 = por %p2700_p1, %p2699_p0 }
  0x24   : > { %1202 = vmatprep.subr.bf16.mxu0 %v2539_v12  ;;  %v314_v4 = vld [vmem:[%s2885_s9 + $0xf0] sm:$0xff]  ;;  %v2583_v6 = vld [vmem:[%s3553_s1 + $0x244] ss:$8 sps:$4 sm:$0xff]   ;;  %v2640_v9 = vld [vmem:[%s3553_s1 + $0x60] ss:$8 sps:$4 sm:$0xff]  }
  0x25   : > { %v329_v7 = vld [vmem:[%s2885_s9 + $0x168] sm:$0xff]  ;;  %v2641_v10 = vld [vmem:[%s3553_s1 + $0x74] ss:$8 sps:$4 sm:$0xff]   ;;  %v412_v11 = vpack.c.bf16 %v321_v5, %v314_v4  ;;  %v2643_v15 = vld [vmem:[%s3553_s1 + $0x70] ss:$8 sps:$4 sm:$0xff]   ;;  %p2702_p3 = pnand %p2701_p2, %p2695_p13 }
  0x26   : > { %1084 = vmatpush1.bf16.msra.mxu1 %v2631_v51  ;;  %v2581_v12 = vld [vmem:[%s3553_s1 + $0x240] ss:$8 sps:$4 sm:$0xff]   ;;  %v420_v13 = vpack.c.bf16 %v336_v8, %v329_v7  ;;  %v2586_v14 = vld [vmem:[%s3553_s1 + $0x254] ss:$8 sps:$4 sm:$0xff]   ;;  %v2650_v33 = vld [vmem:[%s3553_s1 + $0xa4] ss:$8 sps:$4 sm:$0xff]  }
  0x27   : > { %1203 = vmatpush1.bf16.msra.mxu0 %v2541_v16  ;;  %1085 = vmatprep.subr.bf16.mxu1 %v2632_v53  ;;  %v2584_v16 = vld [vmem:[%s3553_s1 + $0x250] ss:$8 sps:$4 sm:$0xff]   ;;  %v349_v36 = vld [vmem:[%s2885_s9 + $0x208] sm:$0xff]  ;;  %v364_v39 = vld [vmem:[%s2885_s9 + $0x280] sm:$0xff] }
  0x28   : > { %1204 = vmatprep.subr.bf16.mxu0 %v2542_v17  ;;  %v2644_v17 = vld [vmem:[%s3553_s1 + $0x84] ss:$8 sps:$4 sm:$0xff]   ;;  %v2653_v41 = vld [vmem:[%s3553_s1 + $0xb4] ss:$8 sps:$4 sm:$0xff]   ;;  %v2593_v43 = vld [vmem:[%s3553_s1 + $0x280] ss:$8 sps:$4 sm:$0xff]  }
  0x29   : > { %v357_v38 = vld [vmem:[%s2885_s9 + $0x248] sm:$0xff]  ;;  %v2598_v45 = vld [vmem:[%s3553_s1 + $0x294] ss:$8 sps:$4 sm:$0xff]   ;;  %v2655_v46 = vld [vmem:[%s3553_s1 + $0xb0] ss:$8 sps:$4 sm:$0xff]  }
  0x2a   : > { %1086 = vmatpush1.bf16.msra.mxu1 %v2634_v59  ;;  %v434_v44 = vpack.c.bf16 %v364_v39, %v357_v38  ;;  %v2601_v51 = vld [vmem:[%s3553_s1 + $0x2a4] ss:$8 sps:$4 sm:$0xff]   ;;  %v378_v53 = vld [vmem:[%s2885_s9 + $0x2f0] sm:$0xff]  ;;  %v2658_v54 = vld [vmem:[%s3553_s1 + $0xc0] ss:$8 sps:$4 sm:$0xff]  }
  0x2b   : > { %1205 = vmatpush1.bf16.msra.mxu0 %v2544_v18  ;;  %1087 = vmatprep.subr.bf16.mxu1 %v2635_v60  ;;  %v328_v18 = vld [vmem:[%s2885_s9 + $0x160] sm:$0xff]  ;;  %v2659_v55 = vld [vmem:[%s3553_s1 + $0xd4] ss:$8 sps:$4 sm:$0xff]   ;;  %v2661_v59 = vld [vmem:[%s3553_s1 + $0xd0] ss:$8 sps:$4 sm:$0xff]  }
  0x2c   : > { %1206 = vmatprep.subr.bf16.mxu0 %v2545_v19  ;;  %v335_v19 = vld [vmem:[%s2885_s9 + $0x198] sm:$0xff]  ;;  %v2664_v4 = vld [vmem:[%s3553_s1 + $0xe0] ss:$8 sps:$4 sm:$0xff]   ;;  %v2624_v38 = vld [vmem:[%s3553_s1 + $0x304] ss:$8 sps:$4 sm:$0xff]  }
  0x2d   : > { %v2604_v58 = vld [vmem:[%s3553_s1 + $0x2b4] ss:$8 sps:$4 sm:$0xff]  }
  0x2e   : > { %1088 = vmatpush1.bf16.msra.mxu1 %v2637_v1  ;;  %v2607_v1 = vld [vmem:[%s3553_s1 + $0x2c4] ss:$8 sps:$4 sm:$0xff]   ;;  %v2665_v5 = vld [vmem:[%s3553_s1 + $0xf4] ss:$8 sps:$4 sm:$0xff]  }
  0x2f   : > { %1207 = vmatpush1.bf16.msra.mxu0 %v2547_v20  ;;  %1089 = vmatprep.subr.bf16.mxu1 %v2638_v3  ;;  %v2589_v20 = vld [vmem:[%s3553_s1 + $0x264] ss:$8 sps:$4 sm:$0xff]   ;;  %v2610_v8 = vld [vmem:[%s3553_s1 + $0x2d4] ss:$8 sps:$4 sm:$0xff]  }
  0x30   : > { %1208 = vmatprep.subr.bf16.mxu0 %v2548_v21  ;;  %v343_v21 = vld [vmem:[%s2885_s9 + $0x1d8] sm:$0xff]  ;;  %v392_v3 = vld [vmem:[%s2885_s9 + $0x360] sm:$0xff] }
  0x31   : > { %v303_v39 = vld [vmem:[%s2885_s9 + $0x98] sm:$0xff] }
  0x32   : > { %1090 = vmatpush1.bf16.msra.mxu1 %v2640_v9  ;;  %v2667_v9 = vld [vmem:[%s3553_s1 + $0xf0] ss:$8 sps:$4 sm:$0xff]  }
  0x33   : > { %1209 = vmatpush1.bf16.msra.mxu0 %v2550_v22  ;;  %1091 = vmatprep.subr.bf16.mxu1 %v2641_v10  ;;  %v350_v22 = vld [vmem:[%s2885_s9 + $0x210] sm:$0xff]  ;;  %v284_v10 = vld [vmem:[%s2885_s9] sm:$0xff] }
  0x34   : > { %1210 = vmatprep.subr.bf16.mxu0 %v2551_v23  ;;  %v2646_v23 = vld [vmem:[%s3553_s1 + $0x80] ss:$8 sps:$4 sm:$0xff]  }
  0x36   : > { %1092 = vmatpush1.bf16.msra.mxu1 %v2643_v15  ;;  %v299_v15 = vld [vmem:[%s2885_s9 + $0x78] sm:$0xff] }
  0x37   : > { %1211 = vmatpush1.bf16.msra.mxu0 %v2553_v24  ;;  %1093 = vmatprep.subr.bf16.mxu1 %v2644_v17  ;;  %v2647_v24 = vld [vmem:[%s3553_s1 + $0x94] ss:$8 sps:$4 sm:$0xff]  }
  0x38   : > { %1212 = vmatprep.subr.bf16.mxu0 %v2554_v25  ;;  %v419_v25 = vpack.c.bf16 %v335_v19, %v328_v18  ;;  %v391_v17 = vld [vmem:[%s2885_s9 + $0x358] sm:$0xff]  ;;  %v2613_v18 = vld [vmem:[%s3553_s1 + $0x2e4] ss:$8 sps:$4 sm:$0xff]  }
  0x39   : > { %v289_v19 = vld [vmem:[%s2885_s9 + $0x28] sm:$0xff] }
  0x3a   : > { %1094 = vmatpush1.bf16.msra.mxu1 %v2646_v23 }
  0x3b   : > { %1213 = vmatpush1.bf16.msra.mxu0 %v2556_v26  ;;  %v285_v26 = vld [vmem:[%s2885_s9 + $0x8] sm:$0xff]  ;;  %1095 = vmatprep.subr.bf16.mxu1 %v2647_v24 }
  0x3c   : > { %1214 = vmatprep.subr.bf16.mxu0 %v2557_v27  ;;  %v2587_v27 = vld [vmem:[%s3553_s1 + $0x260] ss:$8 sps:$4 sm:$0xff]  }
  0x3d   : > { %v2611_v24 = vld [vmem:[%s3553_s1 + $0x2e0] ss:$8 sps:$4 sm:$0xff]  }
  0x3f   : > { %1215 = vmatpush1.bf16.msra.mxu0 %v2559_v28  ;;  %v427_v28 = vpack.c.bf16 %v350_v22, %v343_v21 }
  0x40   : > { %1216 = vmatprep.subr.bf16.mxu0 %v2560_v29  ;;  %v292_v29 = vld [vmem:[%s2885_s9 + $0x40] sm:$0xff] }
  0x41   : > { %v397_v32 = vpack.c.bf16 %v292_v29, %v285_v26  ;;  %v2618_v26 = vld [vmem:[%s3553_s1 + $0x2f4] ss:$8 sps:$4 sm:$0xff]   ;;  %v313_v29 = vld [vmem:[%s2885_s9 + $0xe8] sm:$0xff] }
  0x43   : > { %1217 = vmatpush1.bf16.msra.mxu0 %v2562_v30  ;;  %v2592_v30 = vld [vmem:[%s3553_s1 + $0x274] ss:$8 sps:$4 sm:$0xff]   ;;  %1109 = vmatprep.mubr.bf16.mxu1 %v397_v32  ;;  %v2669_v32 = vld [vmem:[%s3555_s3] sm:$0xff]  }
  0x44   : > { %1218 = vmatprep.subr.bf16.mxu0 %v2563_v31  ;;  %v2649_v31 = vld [vmem:[%s3553_s1 + $0x90] ss:$8 sps:$4 sm:$0xff]  }
  0x45   : > { %1096 = vmatpush1.bf16.msra.mxu1 %v2649_v31  ;;  %v2668_v31 = vld [vmem:[%s3555_s3 + $0x40] sm:$0xff]  }
  0x46   : > { %1097 = vmatprep.subr.bf16.mxu1 %v2650_v33  ;;  %v2670_v33 = vld [vmem:[%s3555_s3 + $0x48] sm:$0xff]  }
  0x47   : > { %1219 = vmatpush1.bf16.msra.mxu0 %v2565_v34  ;;  %v2590_v34 = vld [vmem:[%s3553_s1 + $0x270] ss:$8 sps:$4 sm:$0xff]  }
  0x48   : > { %1220 = vmatprep.subr.bf16.mxu0 %v2566_v35  ;;  %v342_v35 = vld [vmem:[%s2885_s9 + $0x1d0] sm:$0xff] }
  0x49   : > { %v426_v42 = vpack.c.bf16 %v349_v36, %v342_v35  ;;  %v288_v35 = vld [vmem:[%s2885_s9 + $0x20] sm:$0xff]  ;;  %v295_v36 = vld [vmem:[%s2885_s9 + $0x58] sm:$0xff] }
  0x4b   : > { %1221 = vmatpush1.bf16.msra.mxu0 %v2568_v37  ;;  %v2595_v37 = vld [vmem:[%s3553_s1 + $0x284] ss:$8 sps:$4 sm:$0xff]  }
  0x4c   : > { %1303 = vmatprep.subr.bf16.mxu0 %v2571_v40  ;;  %v2652_v40 = vld [vmem:[%s3553_s1 + $0xa0] ss:$8 sps:$4 sm:$0xff]  }
  0x4d   : > { %1098 = vmatpush1.bf16.msra.mxu1 %v2652_v40  ;;  %v310_v40 = vld [vmem:[%s2885_s9 + $0xd0] sm:$0xff] }
  0x4e   : > { %1223 = vmatmul.mubr.bf16.vlgmr.msra.gmra.mrb[0].mxu0 %v398_v47  ;;  %v2596_v47 = vld [vmem:[%s3553_s1 + $0x290] ss:$8 sps:$4 sm:$0xff]   ;;  %1099 = vmatprep.subr.bf16.mxu1 %v2653_v41 }
  0x4f   : > { %1304 = vmatpush1.bf16.msra.mxu0 %v2569_v48  ;;  %1232 = vmatprep.mubr.bf16.mxu0 %v406_v49  ;;  %v356_v48 = vld [vmem:[%s2885_s9 + $0x240] sm:$0xff]  ;;  %v363_v49 = vld [vmem:[%s2885_s9 + $0x278] sm:$0xff] }
  0x50   : > { %1305 = vmatprep.subr.bf16.mxu0 %v2574_v50  ;;  %v2656_v50 = vld [vmem:[%s3553_s1 + $0xc4] ss:$8 sps:$4 sm:$0xff]   ;;  %v433_v57 = vpack.c.bf16 %v363_v49, %v356_v48  ;;  %v319_v48 = vld [vmem:[%s2885_s9 + $0x118] sm:$0xff] }
  0x51   : > { %1100 = vmatpush1.bf16.msra.mxu1 %v2655_v46  ;;  %v408_v46 = vpack.c.bf16 %v310_v40, %v303_v39  ;;  %v327_v49 = vld [vmem:[%s2885_s9 + $0x158] sm:$0xff]  ;;  %v368_v39 = vld [vmem:[%s2885_s9 + $0x2a0] sm:$0xff] }
  0x52   : > { %1101 = vmatprep.subr.bf16.mxu1 %v2656_v50  ;;  %v334_v50 = vld [vmem:[%s2885_s9 + $0x190] sm:$0xff]  ;;  %v375_v40 = vld [vmem:[%s2885_s9 + $0x2d8] sm:$0xff] }
  0x53   : > { %1306 = vmatpush1.bf16.msra.mxu0 %v2572_v52  ;;  %v371_v52 = vld [vmem:[%s2885_s9 + $0x2b8] sm:$0xff] }
  0x54   : > { %1307 = vmatprep.subr.bf16.mxu0 %v2577_v56  ;;  %v2599_v56 = vld [vmem:[%s3553_s1 + $0x2a0] ss:$8 sps:$4 sm:$0xff]   ;;  %v441_v60 = vpack.c.bf16 %v378_v53, %v371_v52  ;;  %v2674_v52 = vld [vmem:[%s3555_s3 + $0x58] sm:$0xff]   ;;  %v302_v53 = vld [vmem:[%s2885_s9 + $0x90] sm:$0xff] }
  0x55   : > { %1102 = vmatpush1.bf16.msra.mxu1 %v2658_v54  ;;  %v309_v54 = vld [vmem:[%s2885_s9 + $0xc8] sm:$0xff] }
  0x56   : > { %1233 = vmatmul.mubr.bf16.gmra.mrb[4].mxu0 %v405_v61  ;;  %v2602_v61 = vld [vmem:[%s3553_s1 + $0x2b0] ss:$8 sps:$4 sm:$0xff]   ;;  %1103 = vmatprep.subr.bf16.mxu1 %v2659_v55 }
  0x57   : > { %1308 = vmatpush1.bf16.msra.mxu0 %v2575_v62  ;;  %1242 = vmatprep.mubr.bf16.mxu0 %v413_v63  ;;  %v370_v62 = vld [vmem:[%s2885_s9 + $0x2b0] sm:$0xff]  ;;  %v377_v63 = vld [vmem:[%s2885_s9 + $0x2e8] sm:$0xff] }
  0x58   : > { %1309 = vmatprep.subr.bf16.mxu0 %v2580_v0  ;;  %v2662_v0 = vld [vmem:[%s3553_s1 + $0xe4] ss:$8 sps:$4 sm:$0xff]   ;;  %v440_v7 = vpack.c.bf16 %v377_v63, %v370_v62  ;;  %v326_v63 = vld [vmem:[%s2885_s9 + $0x150] sm:$0xff] }
  0x59   : > { %1104 = vmatpush1.bf16.msra.mxu1 %v2661_v59  ;;  %v2675_v59 = vld [vmem:[%s3555_s3 + $0x18] sm:$0xff]  }
  0x5a   : > { %1105 = vmatprep.subr.bf16.mxu1 %v2662_v0  ;;  %v333_v0 = vld [vmem:[%s2885_s9 + $0x188] sm:$0xff] }
  0x5b   : > { %1310 = vmatpush1.bf16.msra.mxu0 %v2578_v2  ;;  %v385_v2 = vld [vmem:[%s2885_s9 + $0x328] sm:$0xff] }
  0x5c   : > { %1311 = vmatprep.subr.bf16.mxu0 %v2583_v6  ;;  %v2605_v6 = vld [vmem:[%s3553_s1 + $0x2c0] ss:$8 sps:$4 sm:$0xff]  }
  0x5d   : > { %1106 = vmatpush1.bf16.msra.mxu1 %v2664_v4  ;;  %v2678_v4 = vld [vmem:[%s3555_s3 + $0x68] sm:$0xff]  }
  0x5e   : > { %1243 = vmatmul.mubr.bf16.gmra.mrb[8].mxu0 %v412_v11  ;;  %v291_v11 = vld [vmem:[%s2885_s9 + $0x38] sm:$0xff]  ;;  %1107 = vmatprep.subr.bf16.mxu1 %v2665_v5  ;;  %v316_v5 = vld [vmem:[%s2885_s9 + $0x100] sm:$0xff] }
  0x5f   : > { %1312 = vmatpush1.bf16.msra.mxu0 %v2581_v12  ;;  %1252 = vmatprep.mubr.bf16.mxu0 %v420_v13  ;;  %v448_v12 = vpack.c.bf16 %v392_v3, %v385_v2  ;;  %v2608_v13 = vld [vmem:[%s3553_s1 + $0x2d0] ss:$8 sps:$4 sm:$0xff]   ;;  %v396_v21 = vpack.c.bf16 %v291_v11, %v284_v10  ;;  %v348_v2 = vld [vmem:[%s2885_s9 + $0x200] sm:$0xff]  ;;  %v2679_v11 = vld [vmem:[%s3555_s3 + $0x28] sm:$0xff]  }
  0x60   : > { %1313 = vmatprep.subr.bf16.mxu0 %v2586_v14  ;;  %v384_v14 = vld [vmem:[%s2885_s9 + $0x320] sm:$0xff] }
  0x61   : > { %1108 = vmatpush1.bf16.msra.mxu1 %v2667_v9  ;;  %v447_v23 = vpack.c.bf16 %v391_v17, %v384_v14  ;;  %v2677_v3 = vld [vmem:[%s3555_s3 + $0x20] sm:$0xff]   ;;  %v338_v9 = vld [vmem:[%s2885_s9 + $0x1b0] sm:$0xff]  ;;  %v355_v17 = vld [vmem:[%s2885_s9 + $0x238] sm:$0xff] }
  0x62   : > { %2238 = vmatprep.subr.bf16.mxu1 %v2668_v31  ;;  %v344_v31 = vld [vmem:[%s2885_s9 + $0x1e0] sm:$0xff] }
  0x63   : > { %1314 = vmatpush1.bf16.msra.mxu0 %v2584_v16  ;;  %v306_v16 = vld [vmem:[%s2885_s9 + $0xb0] sm:$0xff] }
  0x64   : > { %1315 = vmatprep.subr.bf16.mxu0 %v2589_v20  ;;  %v296_v20 = vld [vmem:[%s2885_s9 + $0x60] sm:$0xff]  ;;  %v404_v22 = vpack.c.bf16 %v306_v16, %v299_v15  ;;  %1110 = vmatmul.mubr.bf16.vlgmr.msra.gmra.mrb[0].mxu1 %v396_v21  ;;  %v347_v16 = vld [vmem:[%s2885_s9 + $0x1f8] sm:$0xff] }
  0x65   : > { %2239 = vmatpush3.bf16.msra.mxu1 %v2669_v32  ;;  %v340_v15 = vld [vmem:[%s2885_s9 + $0x1c0] sm:$0xff]  ;;  %v351_v32 = vld [vmem:[%s2885_s9 + $0x218] sm:$0xff] }
  0x66   : > { %1253 = vmatmul.mubr.bf16.gmra.mrb[12].mxu0 %v419_v25  ;;  %v401_v25 = vpack.c.bf16 %v296_v20, %v289_v19  ;;  %1119 = vmatprep.mubr.bf16.mxu1 %v404_v22  ;;  %v330_v19 = vld [vmem:[%s2885_s9 + $0x170] sm:$0xff]  ;;  %v337_v20 = vld [vmem:[%s2885_s9 + $0x1a8] sm:$0xff]  ;;  %v424_v21 = vpack.c.bf16 %v347_v16, %v340_v15  ;;  %v360_v16 = vld [vmem:[%s2885_s9 + $0x260] sm:$0xff] }
  0x67   : > { %1316 = vmatpush1.bf16.msra.mxu0 %v2587_v27  ;;  %1262 = vmatprep.mubr.bf16.mxu0 %v427_v28  ;;  %v298_v27 = vld [vmem:[%s2885_s9 + $0x70] sm:$0xff]  ;;  %v305_v28 = vld [vmem:[%s2885_s9 + $0xa8] sm:$0xff] }
  0x68   : > { %1317 = vmatprep.subr.bf16.mxu0 %v2592_v30  ;;  %v320_v30 = vld [vmem:[%s2885_s9 + $0x120] sm:$0xff]  ;;  %2240 = vmatprep.subr.bf16.mxu1 %v2670_v33  ;;  %v345_v22 = vld [vmem:[%s2885_s9 + $0x1e8] sm:$0xff] }
  0x69   : > { %v411_v41 = vpack.c.bf16 %v320_v30, %v313_v29  ;;  %v369_v29 = vld [vmem:[%s2885_s9 + $0x2a8] sm:$0xff]  ;;  %v376_v30 = vld [vmem:[%s2885_s9 + $0x2e0] sm:$0xff] }
  0x6b   : > { %1318 = vmatpush1.bf16.msra.mxu0 %v2590_v34  ;;  %v2616_v34 = vld [vmem:[%s3553_s1 + $0x2f0] ss:$8 sps:$4 sm:$0xff]  }
  0x6c   : > { %1319 = vmatprep.subr.bf16.mxu0 %v2595_v37  ;;  %v403_v37 = vpack.c.bf16 %v305_v28, %v298_v27  ;;  %v354_v27 = vld [vmem:[%s2885_s9 + $0x230] sm:$0xff]  ;;  %v361_v28 = vld [vmem:[%s2885_s9 + $0x268] sm:$0xff] }
  0x6d   : > { %v431_v33 = vpack.c.bf16 %v361_v28, %v354_v27 }
  0x6e   : > { %1263 = vmatmul.mubr.bf16.gmra.mrb[16].mxu0 %v426_v42  ;;  %v2671_v42 = vld [vmem:[%s3555_s3 + $0x8] sm:$0xff]   ;;  %1120 = vmatmul.mubr.bf16.gmra.mrb[4].mxu1 %v403_v37  ;;  %v428_v37 = vpack.c.bf16 %v351_v32, %v344_v31 }
  0x6f   : > { %1320 = vmatpush1.bf16.msra.mxu0 %v2593_v43  ;;  %1272 = vmatprep.mubr.bf16.mxu0 %v434_v44  ;;  %v400_v43 = vpack.c.bf16 %v295_v36, %v288_v35  ;;  %v2672_v44 = vld [vmem:[%s3555_s3 + $0x50] sm:$0xff]   ;;  %v439_v36 = vpack.c.bf16 %v376_v30, %v369_v29 }
  0x70   : > { %1321 = vmatprep.subr.bf16.mxu0 %v2598_v45  ;;  %v2622_v45 = vld [vmem:[%s3553_s1 + $0x300] ss:$8 sps:$4 sm:$0xff]   ;;  %1129 = vmatprep.mubr.bf16.mxu1 %v411_v41  ;;  %v366_v35 = vld [vmem:[%s2885_s9 + $0x290] sm:$0xff]  ;;  %v383_v41 = vld [vmem:[%s2885_s9 + $0x318] sm:$0xff] }
  0x71   : > { %2241 = vmatpush3.bf16.msra.mxu1 %v2671_v42  ;;  %v390_v42 = vld [vmem:[%s2885_s9 + $0x350] sm:$0xff] }
  0x72   : > { %2242 = vmatprep.subr.bf16.mxu1 %v2672_v44  ;;  %v365_v44 = vld [vmem:[%s2885_s9 + $0x288] sm:$0xff] }
  0x73   : > { %1322 = vmatpush1.bf16.msra.mxu0 %v2596_v47  ;;  %v312_v47 = vld [vmem:[%s2885_s9 + $0xe0] sm:$0xff] }
  0x74   : > { %1323 = vmatprep.subr.bf16.mxu0 %v2601_v51  ;;  %v2673_v51 = vld [vmem:[%s3555_s3 + $0x10] sm:$0xff]   ;;  %v410_v55 = vpack.c.bf16 %v319_v48, %v312_v47  ;;  %v380_v47 = vld [vmem:[%s2885_s9 + $0x300] sm:$0xff]  ;;  %v446_v48 = vpack.c.bf16 %v390_v42, %v383_v41 }
  0x75   : > { %2243 = vmatpush3.bf16.msra.mxu1 %v2673_v51  ;;  %v382_v51 = vld [vmem:[%s2885_s9 + $0x310] sm:$0xff] }
  0x76   : > { %1273 = vmatmul.mubr.bf16.gmra.mrb[20].mxu0 %v433_v57  ;;  %v324_v57 = vld [vmem:[%s2885_s9 + $0x140] sm:$0xff]  ;;  %2244 = vmatprep.subr.bf16.mxu1 %v2674_v52  ;;  %v389_v52 = vld [vmem:[%s2885_s9 + $0x348] sm:$0xff] }
  0x77   : > { %1324 = vmatpush1.bf16.msra.mxu0 %v2599_v56  ;;  %1282 = vmatprep.mubr.bf16.mxu0 %v441_v60  ;;  %v317_v56 = vld [vmem:[%s2885_s9 + $0x108] sm:$0xff]  ;;  %v407_v60 = vpack.c.bf16 %v309_v54, %v302_v53  ;;  %v372_v53 = vld [vmem:[%s2885_s9 + $0x2c0] sm:$0xff]  ;;  %v379_v54 = vld [vmem:[%s2885_s9 + $0x2f8] sm:$0xff] }
  0x78   : > { %1325 = vmatprep.subr.bf16.mxu0 %v2604_v58  ;;  %v418_v58 = vpack.c.bf16 %v334_v50, %v327_v49  ;;  %v415_v62 = vpack.c.bf16 %v324_v57, %v317_v56  ;;  %1130 = vmatmul.mubr.bf16.gmra.mrb[8].mxu1 %v410_v55  ;;  %v445_v55 = vpack.c.bf16 %v389_v52, %v382_v51  ;;  %v387_v56 = vld [vmem:[%s2885_s9 + $0x338] sm:$0xff]  ;;  %v394_v57 = vld [vmem:[%s2885_s9 + $0x370] sm:$0xff] }
  0x79   : > { %2245 = vmatpush3.bf16.msra.mxu1 %v2675_v59  ;;  %v450_v59 = vpack.c.bf16 %v394_v57, %v387_v56  ;;  %v552_v56 = vlaneseq }
  0x7a   : > { %1139 = vmatprep.mubr.bf16.mxu1 %v418_v58  ;;  %v442_v58 = vpack.c.bf16 %v379_v54, %v372_v53 }
  0x7b   : > { %1326 = vmatpush1.bf16.msra.mxu0 %v2602_v61  ;;  %v2676_v61 = vld [vmem:[%s3555_s3 + $0x60] sm:$0xff]  }
  0x7c   : > { %1327 = vmatprep.subr.bf16.mxu0 %v2607_v1  ;;  %v341_v1 = vld [vmem:[%s2885_s9 + $0x1c8] sm:$0xff]  ;;  %2246 = vmatprep.subr.bf16.mxu1 %v2676_v61 }
  0x7d   : > { %v425_v10 = vpack.c.bf16 %v348_v2, %v341_v1  ;;  %2247 = vmatpush3.bf16.msra.mxu1 %v2677_v3  ;;  %v393_v61 = vld [vmem:[%s2885_s9 + $0x368] sm:$0xff]  ;;  %v304_v3 = vld [vmem:[%s2885_s9 + $0xa0] sm:$0xff] }
  0x7e   : > { %1283 = vmatmul.mubr.bf16.gmra.mrb[24].mxu0 %v440_v7  ;;  %v417_v7 = vpack.c.bf16 %v333_v0, %v326_v63  ;;  %2248 = vmatprep.subr.bf16.mxu1 %v2678_v4  ;;  %v2756_v63 = vmov 0   ;;  %v290_v0 = vld [vmem:[%s2885_s9 + $0x30] sm:$0xff]  ;;  %v297_v1 = vld [vmem:[%s2885_s9 + $0x68] sm:$0xff]  ;;  %v311_v4 = vld [vmem:[%s2885_s9 + $0xd8] sm:$0xff] }
  0x7f   : > { %1328 = vmatpush1.bf16.msra.mxu0 %v2605_v6  ;;  %1292 = vmatprep.mubr.bf16.mxu0 %v448_v12  ;;  %v323_v6 = vld [vmem:[%s2885_s9 + $0x138] sm:$0xff]  ;;  %v402_v2 = vpack.c.bf16 %v297_v1, %v290_v0 }
  0x80   : > { %1329 = vmatprep.subr.bf16.mxu0 %v2610_v8  ;;  %v331_v8 = vld [vmem:[%s2885_s9 + $0x178] sm:$0xff]  ;;  %v414_v12 = vpack.c.bf16 %v323_v6, %v316_v5  ;;  %1140 = vmatmul.mubr.bf16.gmra.mrb[12].mxu1 %v417_v7  ;;  %v409_v5 = vpack.c.bf16 %v311_v4, %v304_v3  ;;  %v318_v6 = vld [vmem:[%s2885_s9 + $0x110] sm:$0xff]  ;;  %v325_v7 = vld [vmem:[%s2885_s9 + $0x148] sm:$0xff] }
  0x81   : > { %v422_v14 = vpack.c.bf16 %v338_v9, %v331_v8  ;;  %1149 = vmatprep.mubr.bf16.mxu1 %v425_v10  ;;  %2249 = vmatpush3.bf16.msra.mxu1 %v2679_v11  ;;  %v2681_v8 = vld [vmem:[%s3555_s3 + $0x30] sm:$0xff]   ;;  %v416_v9 = vpack.c.bf16 %v325_v7, %v318_v6  ;;  %v332_v10 = vld [vmem:[%s2885_s9 + $0x180] sm:$0xff]  ;;  %v339_v11 = vld [vmem:[%s2885_s9 + $0x1b8] sm:$0xff] }
  0x83   : > { %1330 = vmatpush1.bf16.msra.mxu0 %v2608_v13  ;;  %v2680_v13 = vld [vmem:[%s3555_s3 + $0x70] sm:$0xff]  }
  0x84   : > { %1331 = vmatprep.subr.bf16.mxu0 %v2613_v18  ;;  %v362_v18 = vld [vmem:[%s2885_s9 + $0x270] sm:$0xff]  ;;  %2250 = vmatprep.subr.bf16.mxu1 %v2680_v13 }
  0x85   : > { %2251 = vmatpush3.bf16.msra.mxu1 %v2681_v8  ;;  %v346_v13 = vld [vmem:[%s2885_s9 + $0x1f0] sm:$0xff] }
  0x86   : > { %1293 = vmatmul.mubr.bf16.gmra.mrb[28].mxu0 %v447_v23  ;;  %v352_v23 = vld [vmem:[%s2885_s9 + $0x220] sm:$0xff] }
  0x87   : > { %1332 = vmatpush1.bf16.msra.mxu0 %v2611_v24  ;;  %1335 = vmatprep.mubr.bf16.mxu0 %v401_v25  ;;  %v432_v24 = vpack.c.bf16 %v362_v18, %v355_v17  ;;  %v421_v25 = vpack.c.bf16 %v337_v20, %v330_v19  ;;  %v367_v17 = vld [vmem:[%s2885_s9 + $0x298] sm:$0xff]  ;;  %v374_v19 = vld [vmem:[%s2885_s9 + $0x2d0] sm:$0xff]  ;;  %v381_v20 = vld [vmem:[%s2885_s9 + $0x308] sm:$0xff] }
  0x88   : > { %1333 = vmatprep.subr.bf16.mxu0 %v2618_v26  ;;  %v429_v26 = vpack.c.bf16 %v352_v23, %v345_v22  ;;  %1150 = vmatmul.mubr.bf16.gmra.mrb[16].mxu1 %v424_v21  ;;  %v437_v18 = vpack.c.bf16 %v367_v17, %v360_v16  ;;  %v444_v21 = vpack.c.bf16 %v381_v20, %v374_v19  ;;  %v388_v22 = vld [vmem:[%s2885_s9 + $0x340] sm:$0xff]  ;;  %v395_v23 = vld [vmem:[%s2885_s9 + $0x378] sm:$0xff] }
  0x89   : > { %1159 = vmatprep.mubr.bf16.mxu1 %v432_v24  ;;  %v451_v24 = vpack.c.bf16 %v395_v23, %v388_v22 }
  0x8b   : > { %1334 = vmatpush1.bf16.msra.mxu0 %v2616_v34  ;;  %v359_v34 = vld [vmem:[%s2885_s9 + $0x258] sm:$0xff] }
  0x8c   : > { %1416 = vmatprep.subr.bf16.mxu0 %v2624_v38  ;;  %v436_v38 = vpack.c.bf16 %v366_v35, %v359_v34  ;;  %v3319_v35 = vld [vmem:[%s3557_s5] sm:$0xff]  }
  0x8e   : > { %1336 = vmatmul.mubr.bf16.vlgmr.msra.gmra.mrb[0].mxu0 %v400_v43  ;;  %v358_v43 = vld [vmem:[%s2885_s9 + $0x250] sm:$0xff] }
  0x8f   : > { %1417 = vmatpush1.bf16.msra.mxu0 %v2622_v45  ;;  %1345 = vmatprep.mubr.bf16.mxu0 %v408_v46  ;;  %v438_v45 = vpack.c.bf16 %v375_v40, %v368_v39  ;;  %v373_v46 = vld [vmem:[%s2885_s9 + $0x2c8] sm:$0xff]  ;;  %v435_v49 = vpack.c.bf16 %v365_v44, %v358_v43 }
  0x90   : > { %1160 = vmatmul.mubr.bf16.gmra.mrb[20].mxu1 %v431_v33  ;;  %v443_v50 = vpack.c.bf16 %v380_v47, %v373_v46 }
  0x91   : > { %1169 = vmatprep.mubr.bf16.mxu1 %v439_v36 }
  0x96   : > { %1346 = vmatmul.mubr.bf16.gmra.mrb[4].mxu0 %v407_v60  ;;  %v386_v60 = vld [vmem:[%s2885_s9 + $0x330] sm:$0xff] }
  0x97   : > { %1355 = vmatprep.mubr.bf16.mxu0 %v415_v62  ;;  %v449_v62 = vpack.c.bf16 %v393_v61, %v386_v60  ;;  %v553_v61 = vshrl.u32 %v552_v56, 7 }
  0x98   : > { %1170 = vmatmul.mubr.bf16.gmra.mrb[24].mxu1 %v438_v45 }
  0x99   : > { %1179 = vmatprep.mubr.bf16.mxu1 %v446_v48  ;;  %v558_v0 = vsub.s32 1, %v553_v61 }
  0x9e   : > { %1356 = vmatmul.mubr.bf16.gmra.mrb[8].mxu0 %v414_v12  ;;  %v423_v12 = vpack.c.bf16 %v339_v11, %v332_v10 }
  0x9f   : > { %1365 = vmatprep.mubr.bf16.mxu0 %v422_v14  ;;  %v353_v14 = vld [vmem:[%s2885_s9 + $0x228] sm:$0xff] }
  0xa0   : > { %1180 = vmatmul.mubr.bf16.gmra.mrb[28].mxu1 %v445_v55  ;;  %v430_v15 = vpack.c.bf16 %v353_v14, %v346_v13 }
  0xa6   : > { %1366 = vmatmul.mubr.bf16.gmra.mrb[12].mxu0 %v421_v25  ;;  %v2682_v25 = vld [vmem:[%s3555_s3 + $0x78] sm:$0xff]  }
  0xa7   : > { %1375 = vmatprep.mubr.bf16.mxu0 %v429_v26  ;;  %v2683_v26 = vld [vmem:[%s3555_s3 + $0x38] sm:$0xff]   ;;  %2252 = vmatprep.subr.bf16.mxu1 %v2682_v25 }
  0xa8   : > { %2253 = vmatpush3.bf16.msra.mxu1 %v2683_v26 }
  0xa9   : > { %2318 = vmatprep.subr.bf16.mxu1 %v3319_v35 }
  0xae   : > { %1376 = vmatmul.mubr.bf16.gmra.mrb[16].mxu0 %v428_v37 }
  0xaf   : > { %1385 = vmatprep.mubr.bf16.mxu0 %v436_v38 }
  0xb6   : > { %1386 = vmatmul.mubr.bf16.gmra.mrb[20].mxu0 %v435_v49 }
  0xb7   : > { %1395 = vmatprep.mubr.bf16.mxu0 %v443_v50 }
  0xbe   : > { %1396 = vmatmul.mubr.bf16.gmra.mrb[24].mxu0 %v442_v58 }
  0xbf   : > { %1405 = vmatprep.mubr.bf16.mxu0 %v450_v59 }
  0xc6   : > { %1406 = vmatmul.mubr.bf16.gmra.mrb[28].mxu0 %v449_v62  ;;  %v554_v62 = vsub.s32 0, %v553_v61 }
  0xc7   : > { %1448 = vmatprep.mubr.bf16.mxu0 %v2756_v63 }
  0xce   : > { %2198 = vmatmul.mubr.msk.bf16.vlgmr.msra.gmra.mrb[0].mxu0 %vm1052_vm0, %v402_v2 }
  0xcf   : > { %1458 = vmatprep.mubr.bf16.mxu0 %v2756_v63 }
  0xd6   : > { %2199 = vmatmul.mubr.msk.bf16.gmra.mrb[4].mxu0 %vm1052_vm0, %v409_v5 }
  0xd7   : > { %1468 = vmatprep.mubr.bf16.mxu0 %v2756_v63 }
  0xde   : > { %2200 = vmatmul.mubr.msk.bf16.gmra.mrb[8].mxu0 %vm1052_vm0, %v416_v9 }
  0xdf   : > { %1478 = vmatprep.mubr.bf16.mxu0 %v2756_v63 }
  0xe6   : > { %2201 = vmatmul.mubr.msk.bf16.gmra.mrb[12].mxu0 %vm1052_vm0, %v423_v12 }
  0xe7   : > { %1488 = vmatprep.mubr.bf16.mxu0 %v2756_v63 }
  0xee   : > { %2202 = vmatmul.mubr.msk.bf16.gmra.mrb[16].mxu0 %vm1052_vm0, %v430_v15 }
  0xef   : > { %1498 = vmatprep.mubr.bf16.mxu0 %v2756_v63 }
  0xf6   : > { %2203 = vmatmul.mubr.msk.bf16.gmra.mrb[20].mxu0 %vm1052_vm0, %v437_v18 }
  0xf7   : > { %1508 = vmatprep.mubr.bf16.mxu0 %v2756_v63 }
  0xfe   : > { %2204 = vmatmul.mubr.msk.bf16.gmra.mrb[24].mxu0 %vm1052_vm0, %v444_v21 }
  0xff   : > { %1518 = vmatprep.mubr.bf16.mxu0 %v2756_v63  ;;  %v550_v63 = vld [vmem:[%s3554_s2] sm:$0x3] }
 0x100   : > { %v3373_v1 = vrot.slane %v550_v63, %v554_v62  ;;  %v3375_v2 = vrot.slane %v550_v63, %v558_v0  ;;  %v2686_v63 = vld [vmem:[%s3557_s5 + $0x10] sm:$0xff]  }
 0x106   : > { %2205 = vmatmul.mubr.msk.bf16.gmra.mrb[28].mxu0 %vm1052_vm0, %v451_v24 }
 0x137   : > { %v1111_v27 = vpop.f32.mrb[0].mxu1 }
 0x138   : > { %v1113_v28 = vpop.f32.mrb[1].mxu1  ;;  %v1112_v3 = vadd.f32 %v1111_v27, %v3373_v1  ;;  %v2685_v27 = vld [vmem:[%s3557_s5 + $0x8] sm:$0xff]  }
 0x139   : > { %v1115_v29 = vpop.f32.mrb[2].mxu1  ;;  %v1114_v4 = vadd.f32 %v1113_v28, %v3375_v2 }
 0x13a   : > { %v1117_v30 = vpop.f32.mrb[3].mxu1  ;;  %v1116_v6 = vadd.f32 %v1115_v29, %v3373_v1 }
 0x13b   : > { %v1118_v9 = vadd.f32 %v1117_v30, %v3375_v2 }
 0x141   : > { %v1121_v31 = vpop.f32.mrb[4].mxu1 }
 0x142   : > { %v1123_v32 = vpop.f32.mrb[5].mxu1  ;;  %v1122_v17 = vadd.f32 %v1121_v31, %v3373_v1 }
 0x143   : > { %v1125_v33 = vpop.f32.mrb[6].mxu1  ;;  %v1124_v20 = vadd.f32 %v1123_v32, %v3375_v2 }
 0x144   : > { %v1127_v34 = vpop.f32.mrb[7].mxu1  ;;  %v1126_v24 = vadd.f32 %v1125_v33, %v3373_v1 }
 0x145   : > { %v1128_v28 = vadd.f32 %v1127_v34, %v3375_v2 }
 0x14b   : > { %v3321_v36 = vpop.f32.mrb[8].mxu1 }
 0x14c   : > { %v3324_v37 = vpop.f32.mrb[9].mxu1  ;;  %v1132_v33 = vadd.f32 %v3321_v36, %v3373_v1 }
 0x14d   : > { %v3326_v38 = vpop.f32.mrb[10].mxu1 }
 0x14e   : > { %v3328_v39 = vpop.f32.mrb[11].mxu1 }
 0x14f   : > { %v1138_v36 = vadd.f32 %v3328_v39, %v3375_v2 }
 0x153   : > { %v3330_v40 = vpop.f32.mrb[12].mxu1 }
 0x154   : > { %v3332_v41 = vpop.f32.mrb[13].mxu1 }
 0x155   : > { %v3334_v42 = vpop.f32.mrb[14].mxu1 }
 0x156   : > { %v3336_v43 = vpop.f32.mrb[15].mxu1 }
 0x15b   : > { %v3338_v44 = vpop.f32.mrb[16].mxu1 }
 0x15c   : > { %v3340_v45 = vpop.f32.mrb[17].mxu1 }
 0x15d   : > { %v3342_v46 = vpop.f32.mrb[18].mxu1 }
 0x15e   : > { %v3344_v47 = vpop.f32.mrb[19].mxu1 }
 0x163   : > { %v3346_v48 = vpop.f32.mrb[20].mxu1 }
 0x164   : > { %v3348_v49 = vpop.f32.mrb[21].mxu1 }
 0x165   : > { %v3350_v50 = vpop.f32.mrb[22].mxu1 }
 0x166   : > { %v3352_v51 = vpop.f32.mrb[23].mxu1 }
 0x16b   : > { %v3354_v52 = vpop.f32.mrb[24].mxu1 }
 0x16c   : > { %v3356_v53 = vpop.f32.mrb[25].mxu1 }
 0x16d   : > { %v3358_v54 = vpop.f32.mrb[26].mxu1 }
 0x16e   : > { %v3360_v55 = vpop.f32.mrb[27].mxu1 }
 0x173   : > { %v3362_v57 = vpop.f32.mrb[28].mxu1 }
 0x174   : > { %v3364_v58 = vpop.f32.mrb[29].mxu1 }
 0x175   : > { %v3366_v59 = vpop.f32.mrb[30].mxu1 }
 0x176   : > { %v3368_v60 = vpop.f32.mrb[31].mxu1 }
 0x1a1   : > { %v1450_v5 = vpop.f32.mrb[0].mxu0 }
 0x1a2   : > { %v2351_v7 = vadd.f32 %v1450_v5, %v1112_v3  ;;  %v1452_v8 = vpop.f32.mrb[1].mxu0  ;;  %v1134_v3 = vadd.f32 %v3324_v37, %v3375_v2 }
 0x1a3   : > { %v2353_v10 = vadd.f32 %v1452_v8, %v1114_v4  ;;  %v1454_v11 = vpop.f32.mrb[2].mxu0 }
 0x1a4   : > { %v2355_v12 = vadd.f32 %v1454_v11, %v1116_v6  ;;  %v1456_v13 = vpop.f32.mrb[3].mxu0  ;;  %v1529_v15 = vmax.f32 %v2351_v7, 0.0 }
 0x1a5   : > { %v2357_v14 = vadd.f32 %v1456_v13, %v1118_v9  ;;  %v1530_v18 = vmax.f32 %v2353_v10, 0.0 }
 0x1a6   : > { %v1531_v16 = vmax.f32 %v2355_v12, 0.0 }
 0x1a7   : > { %v1532_v19 = vmax.f32 %v2357_v14, 0.0 }
 0x1a8   : > { %v1561_v21 = vpack.c.bf16 %v1531_v16, %v1529_v15  ;;  %v1142_v15 = vadd.f32 %v3330_v40, %v3373_v1 }
 0x1a9   : > { %v1562_v22 = vpack.c.bf16 %v1532_v19, %v1530_v18  ;;  %v1460_v23 = vpop.f32.mrb[4].mxu0 }
 0x1aa   : > { %v2359_v25 = vadd.f32 %v1460_v23, %v1122_v17  ;;  %v1462_v26 = vpop.f32.mrb[5].mxu0  ;;  %v1144_v17 = vadd.f32 %v3332_v41, %v3375_v2  ;;  %v1148_v23 = vadd.f32 %v3336_v43, %v3375_v2 }
 0x1ab   : > { %v2361_v29 = vadd.f32 %v1462_v26, %v1124_v20  ;;  %v1464_v30 = vpop.f32.mrb[6].mxu0  ;;  %1744 = vmatprep.mubr.bf16.mxu1 %v1562_v22  ;;  %v1146_v20 = vadd.f32 %v3334_v42, %v3373_v1  ;;  %v1154_v42 = vadd.f32 %v3340_v45, %v3375_v2 }
 0x1ac   : > { %v2363_v31 = vadd.f32 %v1464_v30, %v1126_v24  ;;  %v1466_v56 = vpop.f32.mrb[7].mxu0  ;;  %1745 = vmatmul.mubr.bf16.vlgmr.msra.gmra.mrb[32].mxu1 %v1561_v21  ;;  %v1533_v61 = vmax.f32 %v2359_v25, 0.0 }
 0x1ad   : > { %v2365_v32 = vadd.f32 %v1466_v56, %v1128_v28  ;;  %2319 = vmatpush3.bf16.msra.mxu1 %v3319_v35  ;;  %v1534_v34 = vmax.f32 %v2361_v29, 0.0  ;;  %v1136_v35 = vadd.f32 %v3326_v38, %v3373_v1  ;;  %v1152_v29 = vadd.f32 %v3338_v44, %v3373_v1 }
 0x1ae   : > { %v1535_v62 = vmax.f32 %v2363_v31, 0.0  ;;  %2320 = vmatprep.subr.bf16.mxu1 %v2685_v27 }
 0x1af   : > { %v1536_v0 = vmax.f32 %v2365_v32, 0.0 }
 0x1b0   : > { %v1563_v4 = vpack.c.bf16 %v1535_v62, %v1533_v61  ;;  %v1156_v61 = vadd.f32 %v3342_v46, %v3373_v1  ;;  %v1164_v46 = vadd.f32 %v3348_v49, %v3375_v2 }
 0x1b1   : > { %v1564_v5 = vpack.c.bf16 %v1536_v0, %v1534_v34  ;;  %v1470_v6 = vpop.f32.mrb[8].mxu0  ;;  %2321 = vmatpush3.bf16.msra.mxu1 %v2685_v27 }
 0x1b2   : > { %v2367_v7 = vadd.f32 %v1470_v6, %v1132_v33  ;;  %v1472_v8 = vpop.f32.mrb[9].mxu0  ;;  %2322 = vmatprep.subr.bf16.mxu1 %v2686_v63  ;;  %v1162_v6 = vadd.f32 %v3346_v48, %v3373_v1 }
 0x1b3   : > { %v2369_v9 = vadd.f32 %v1472_v8, %v1134_v3  ;;  %v1474_v10 = vpop.f32.mrb[10].mxu0  ;;  %1752 = vmatprep.mubr.bf16.mxu1 %v1564_v5 }
 0x1b4   : > { %v2371_v11 = vadd.f32 %v1474_v10, %v1136_v35  ;;  %v1476_v12 = vpop.f32.mrb[11].mxu0  ;;  %1753 = vmatmul.mubr.bf16.gmra.mrb[36].mxu1 %v1563_v4  ;;  %v1537_v13 = vmax.f32 %v2367_v7, 0.0 }
 0x1b5   : > { %v2373_v37 = vadd.f32 %v1476_v12, %v1138_v36  ;;  %2323 = vmatpush3.bf16.msra.mxu1 %v2686_v63  ;;  %v1538_v38 = vmax.f32 %v2369_v9, 0.0  ;;  %v1158_v63 = vadd.f32 %v3344_v47, %v3375_v2  ;;  %v1166_v9 = vadd.f32 %v3350_v50, %v3373_v1 }
 0x1b6   : > { %v1539_v14 = vmax.f32 %v2371_v11, 0.0  ;;  %v1168_v12 = vadd.f32 %v3352_v51, %v3375_v2  ;;  %v1174_v50 = vadd.f32 %v3356_v53, %v3375_v2 }
 0x1b7   : > { %v1540_v16 = vmax.f32 %v2373_v37, 0.0 }
 0x1b8   : > { %v1565_v18 = vpack.c.bf16 %v1539_v14, %v1537_v13 }
 0x1b9   : > { %v1566_v39 = vpack.c.bf16 %v1540_v16, %v1538_v38  ;;  %v1480_v19 = vpop.f32.mrb[12].mxu0  ;;  %v1172_v16 = vadd.f32 %v3354_v52, %v3373_v1 }
 0x1ba   : > { %v2375_v21 = vadd.f32 %v1480_v19, %v1142_v15  ;;  %v1482_v22 = vpop.f32.mrb[13].mxu0 }
 0x1bb   : > { %v2377_v24 = vadd.f32 %v1482_v22, %v1144_v17  ;;  %v1484_v25 = vpop.f32.mrb[14].mxu0  ;;  %1760 = vmatprep.mubr.bf16.mxu1 %v1566_v39 }
 0x1bc   : > { %v2379_v40 = vadd.f32 %v1484_v25, %v1146_v20  ;;  %v1486_v26 = vpop.f32.mrb[15].mxu0  ;;  %1761 = vmatmul.mubr.bf16.gmra.mrb[40].mxu1 %v1565_v18  ;;  %v1541_v28 = vmax.f32 %v2375_v21, 0.0  ;;  %v1176_v20 = vadd.f32 %v3358_v54, %v3373_v1  ;;  %v1184_v54 = vadd.f32 %v3364_v58, %v3375_v2 }
 0x1bd   : > { %v2381_v27 = vadd.f32 %v1486_v26, %v1148_v23  ;;  %v1542_v30 = vmax.f32 %v2377_v24, 0.0  ;;  %v1178_v23 = vadd.f32 %v3360_v55, %v3375_v2 }
 0x1be   : > { %v1543_v41 = vmax.f32 %v2379_v40, 0.0 }
 0x1bf   : > { %v1544_v31 = vmax.f32 %v2381_v27, 0.0 }
 0x1c0   : > { %v1567_v56 = vpack.c.bf16 %v1543_v41, %v1541_v28  ;;  %v1182_v28 = vadd.f32 %v3362_v57, %v3373_v1 }
 0x1c1   : > { %v1568_v32 = vpack.c.bf16 %v1544_v31, %v1542_v30  ;;  %v1490_v43 = vpop.f32.mrb[16].mxu0 }
 0x1c2   : > { %v2383_v62 = vadd.f32 %v1490_v43, %v1152_v29  ;;  %v1492_v33 = vpop.f32.mrb[17].mxu0  ;;  %v1188_v43 = vadd.f32 %v3368_v60, %v3375_v2  ;;  %v2688_v60 = vld [vmem:[%s3557_s5 + $0x20] sm:$0xff]   ;;  %v2690_v2 = vld [vmem:[%s3557_s5 + $0x30] sm:$0xff]  }
 0x1c3   : > { %v2385_v34 = vadd.f32 %v1492_v33, %v1154_v42  ;;  %v1494_v0 = vpop.f32.mrb[18].mxu0  ;;  %1768 = vmatprep.mubr.bf16.mxu1 %v1568_v32  ;;  %v1186_v42 = vadd.f32 %v3366_v59, %v3373_v1  ;;  %v2687_v59 = vld [vmem:[%s3557_s5 + $0x18] sm:$0xff]   ;;  %v2689_v1 = vld [vmem:[%s3557_s5 + $0x28] sm:$0xff]  }
 0x1c4   : > { %v2387_v44 = vadd.f32 %v1494_v0, %v1156_v61  ;;  %v1496_v3 = vpop.f32.mrb[19].mxu0  ;;  %1769 = vmatmul.mubr.bf16.gmra.mrb[44].mxu1 %v1567_v56  ;;  %v1545_v5 = vmax.f32 %v2383_v62, 0.0  ;;  %2324 = vmatprep.subr.bf16.mxu1 %v2687_v59 }
 0x1c5   : > { %v2389_v4 = vadd.f32 %v1496_v3, %v1158_v63  ;;  %v1546_v35 = vmax.f32 %v2385_v34, 0.0  ;;  %2325 = vmatpush3.bf16.msra.mxu1 %v2687_v59 }
 0x1c6   : > { %v1547_v45 = vmax.f32 %v2387_v44, 0.0  ;;  %2326 = vmatprep.subr.bf16.mxu1 %v2688_v60 }
 0x1c7   : > { %v1548_v7 = vmax.f32 %v2389_v4, 0.0 }
 0x1c8   : > { %v1569_v8 = vpack.c.bf16 %v1547_v45, %v1545_v5  ;;  %v2691_v5 = vld [vmem:[%s3557_s5 + $0x38] sm:$0xff]  }
 0x1c9   : > { %v1570_v36 = vpack.c.bf16 %v1548_v7, %v1546_v35  ;;  %v1500_v47 = vpop.f32.mrb[20].mxu0  ;;  %2327 = vmatpush3.bf16.msra.mxu1 %v2688_v60 }
 0x1ca   : > { %v2391_v10 = vadd.f32 %v1500_v47, %v1162_v6  ;;  %v1502_v11 = vpop.f32.mrb[21].mxu0  ;;  %2328 = vmatprep.subr.bf16.mxu1 %v2689_v1  ;;  %v3458_v6 = vld [vmem:[%s3556_s4] ss:$0 sm:$0xff] }
 0x1cb   : > { %v2393_v37 = vadd.f32 %v1502_v11, %v1164_v46  ;;  %v1504_v13 = vpop.f32.mrb[22].mxu0  ;;  %1776 = vmatprep.mubr.bf16.mxu1 %v1570_v36 }
 0x1cc   : > { %v2395_v48 = vadd.f32 %v1504_v13, %v1166_v9  ;;  %v1506_v14 = vpop.f32.mrb[23].mxu0  ;;  %1777 = vmatmul.mubr.bf16.gmra.mrb[48].mxu1 %v1569_v8  ;;  %v1549_v38 = vmax.f32 %v2391_v10, 0.0 }
 0x1cd   : > { %v2397_v15 = vadd.f32 %v1506_v14, %v1168_v12  ;;  %v1550_v17 = vmax.f32 %v2393_v37, 0.0  ;;  %2329 = vmatpush3.bf16.msra.mxu1 %v2689_v1 }
 0x1ce   : > { %v1551_v49 = vmax.f32 %v2395_v48, 0.0  ;;  %2330 = vmatprep.subr.bf16.mxu1 %v2690_v2 }
 0x1cf   : > { %v1552_v18 = vmax.f32 %v2397_v15, 0.0 }
 0x1d0   : > { %v1571_v39 = vpack.c.bf16 %v1551_v49, %v1549_v38 }
 0x1d1   : > { %v1572_v19 = vpack.c.bf16 %v1552_v18, %v1550_v17  ;;  %v1510_v51 = vpop.f32.mrb[24].mxu0  ;;  %2331 = vmatpush3.bf16.msra.mxu1 %v2690_v2 }
 0x1d2   : > { %v2399_v21 = vadd.f32 %v1510_v51, %v1172_v16  ;;  %v1512_v22 = vpop.f32.mrb[25].mxu0  ;;  %2332 = vmatprep.subr.bf16.mxu1 %v2691_v5 }
 0x1d3   : > { %v2401_v24 = vadd.f32 %v1512_v22, %v1174_v50  ;;  %v1514_v25 = vpop.f32.mrb[26].mxu0  ;;  %1784 = vmatprep.mubr.bf16.mxu1 %v1572_v19 }
 0x1d4   : > { %v2403_v52 = vadd.f32 %v1514_v25, %v1176_v20  ;;  %v1516_v40 = vpop.f32.mrb[27].mxu0  ;;  %1785 = vmatmul.mubr.bf16.gmra.mrb[52].mxu1 %v1571_v39  ;;  %v1553_v27 = vmax.f32 %v2399_v21, 0.0 }
 0x1d5   : > { %v2405_v26 = vadd.f32 %v1516_v40, %v1178_v23  ;;  %v1554_v41 = vmax.f32 %v2401_v24, 0.0  ;;  %2333 = vmatpush3.bf16.msra.mxu1 %v2691_v5 }
 0x1d6   : > { %v1555_v53 = vmax.f32 %v2403_v52, 0.0 }
 0x1d7   : > { %v1556_v29 = vmax.f32 %v2405_v26, 0.0 }
 0x1d8   : > { %v1573_v30 = vpack.c.bf16 %v1555_v53, %v1553_v27 }
 0x1d9   : > { %v1574_v31 = vpack.c.bf16 %v1556_v29, %v1554_v41  ;;  %v1520_v55 = vpop.f32.mrb[28].mxu0 }
 0x1da   : > { %v2407_v56 = vadd.f32 %v1520_v55, %v1182_v28  ;;  %v1522_v32 = vpop.f32.mrb[29].mxu0 }
 0x1db   : > { %v2409_v61 = vadd.f32 %v1522_v32, %v1184_v54  ;;  %v1524_v62 = vpop.f32.mrb[30].mxu0  ;;  %1792 = vmatprep.mubr.bf16.mxu1 %v1574_v31 }
 0x1dc   : > { %v2411_v57 = vadd.f32 %v1524_v62, %v1186_v42  ;;  %v1526_v33 = vpop.f32.mrb[31].mxu0  ;;  %1793 = vmatmul.mubr.bf16.gmra.mrb[56].mxu1 %v1573_v30  ;;  %v1557_v34 = vmax.f32 %v2407_v56, 0.0 }
 0x1dd   : > { %v2413_v63 = vadd.f32 %v1526_v33, %v1188_v43  ;;  %v1558_v0 = vmax.f32 %v2409_v61, 0.0 }
 0x1de   : > { %v1559_v58 = vmax.f32 %v2411_v57, 0.0 }
 0x1df   : > { %v1560_v44 = vmax.f32 %v2413_v63, 0.0 }
 0x1e0   : > { %v1575_v3 = vpack.c.bf16 %v1559_v58, %v1557_v34 }
 0x1e1   : > { %v1576_v4 = vpack.c.bf16 %v1560_v44, %v1558_v0 }
 0x1e3   : > { %1800 = vmatprep.mubr.bf16.mxu1 %v1576_v4 }
 0x1e4   : > { %1801 = vmatmul.mubr.bf16.gmra.mrb[60].mxu1 %v1575_v3 }
 0x27f   : > { %v2254_v45 = vpop.f32.mrb[32].mxu1 }
 0x280   : > { %v2255_v35 = vpop.f32.mrb[33].mxu1 }
 0x281   : > { %v2256_v7 = vadd.f32 %v2255_v35, %v2254_v45  ;;  %v2257_v46 = vpop.f32.mrb[34].mxu1 }
 0x282   : > { %v2258_v8 = vpop.f32.mrb[35].mxu1 }
 0x283   : > { %v1747_v36 = vadd.f32 %v2256_v7, %v3458_v6  ;;  %v2259_v47 = vadd.f32 %v2258_v8, %v2257_v46 }
 0x285   : > { %v1750_v9 = vadd.f32 %v2259_v47, %v3458_v6  ;;  %v1809_v10 = vmax.f32 %v1747_v36, 0.0 }
 0x287   : > { %v1810_v11 = vmax.f32 %v1750_v9, 0.0  ;;  %v2260_v12 = vpop.f32.mrb[36].mxu1 }
 0x288   : > { %v2261_v37 = vpop.f32.mrb[37].mxu1 }
 0x289   : > { %v2262_v13 = vadd.f32 %v2261_v37, %v2260_v12  ;;  %v2263_v48 = vpop.f32.mrb[38].mxu1  ;;  %v1825_v14 = vpack.c.bf16 %v1810_v11, %v1809_v10 }
 0x28a   : > { %v2264_v15 = vpop.f32.mrb[39].mxu1 }
 0x28b   : > { %v1755_v38 = vadd.f32 %v2262_v13, %v3458_v6  ;;  %v2265_v49 = vadd.f32 %v2264_v15, %v2263_v48  ;;  %2334 = vmatprep.mubr.bf16.mxu1 %v1825_v14 }
 0x28d   : > { %v1758_v16 = vadd.f32 %v2265_v49, %v3458_v6  ;;  %v1811_v17 = vmax.f32 %v1755_v38, 0.0 }
 0x28f   : > { %v1812_v18 = vmax.f32 %v1758_v16, 0.0  ;;  %v2266_v50 = vpop.f32.mrb[40].mxu1 }
 0x290   : > { %v2267_v39 = vpop.f32.mrb[41].mxu1 }
 0x291   : > { %v1826_v19 = vpack.c.bf16 %v1812_v18, %v1811_v17  ;;  %v2268_v51 = vadd.f32 %v2267_v39, %v2266_v50  ;;  %v2269_v20 = vpop.f32.mrb[42].mxu1 }
 0x292   : > { %v2270_v21 = vpop.f32.mrb[43].mxu1 }
 0x293   : > { %v1763_v22 = vadd.f32 %v2268_v51, %v3458_v6  ;;  %v2271_v23 = vadd.f32 %v2270_v21, %v2269_v20  ;;  %2335 = vmatmul.mubr.bf16.vlgmr.msra.gmra.mrb[64].mxu1 %v1826_v19  ;;  %v2223_v20 = vld [vmem:[%s3558_s6] ss:$0 sm:$0xff] }
 0x295   : > { %v1766_v24 = vadd.f32 %v2271_v23, %v3458_v6  ;;  %v1813_v25 = vmax.f32 %v1763_v22, 0.0 }
 0x297   : > { %v1814_v52 = vmax.f32 %v1766_v24, 0.0  ;;  %v2272_v40 = vpop.f32.mrb[44].mxu1 }
 0x298   : > { %v2273_v26 = vpop.f32.mrb[45].mxu1 }
 0x299   : > { %v2274_v27 = vadd.f32 %v2273_v26, %v2272_v40  ;;  %v2275_v53 = vpop.f32.mrb[46].mxu1  ;;  %v1827_v28 = vpack.c.bf16 %v1814_v52, %v1813_v25 }
 0x29a   : > { %v2276_v41 = vpop.f32.mrb[47].mxu1 }
 0x29b   : > { %v1771_v29 = vadd.f32 %v2274_v27, %v3458_v6  ;;  %v2277_v54 = vadd.f32 %v2276_v41, %v2275_v53  ;;  %2338 = vmatprep.mubr.bf16.mxu1 %v1827_v28 }
 0x29d   : > { %v1774_v30 = vadd.f32 %v2277_v54, %v3458_v6  ;;  %v1815_v31 = vmax.f32 %v1771_v29, 0.0 }
 0x29f   : > { %v1816_v55 = vmax.f32 %v1774_v30, 0.0  ;;  %v2278_v42 = vpop.f32.mrb[48].mxu1 }
 0x2a0   : > { %v2279_v56 = vpop.f32.mrb[49].mxu1 }
 0x2a1   : > { %v2280_v32 = vadd.f32 %v2279_v56, %v2278_v42  ;;  %v2281_v43 = vpop.f32.mrb[50].mxu1  ;;  %v1828_v61 = vpack.c.bf16 %v1816_v55, %v1815_v31 }
 0x2a2   : > { %v2282_v62 = vpop.f32.mrb[51].mxu1 }
 0x2a3   : > { %v1779_v57 = vadd.f32 %v2280_v32, %v3458_v6  ;;  %v2283_v33 = vadd.f32 %v2282_v62, %v2281_v43  ;;  %2339 = vmatmul.mubr.bf16.gmra.mrb[68].mxu1 %v1828_v61 }
 0x2a5   : > { %v1782_v63 = vadd.f32 %v2283_v33, %v3458_v6  ;;  %v1817_v34 = vmax.f32 %v1779_v57, 0.0 }
 0x2a7   : > { %v1818_v58 = vmax.f32 %v1782_v63, 0.0  ;;  %v2284_v0 = vpop.f32.mrb[52].mxu1 }
 0x2a8   : > { %v2285_v44 = vpop.f32.mrb[53].mxu1 }
 0x2a9   : > { %v2286_v3 = vadd.f32 %v2285_v44, %v2284_v0  ;;  %v2287_v4 = vpop.f32.mrb[54].mxu1  ;;  %v1829_v59 = vpack.c.bf16 %v1818_v58, %v1817_v34 }
 0x2aa   : > { %v2288_v60 = vpop.f32.mrb[55].mxu1 }
 0x2ab   : > { %v1787_v1 = vadd.f32 %v2286_v3, %v3458_v6  ;;  %v2289_v2 = vadd.f32 %v2288_v60, %v2287_v4  ;;  %2342 = vmatprep.mubr.bf16.mxu1 %v1829_v59 }
 0x2ad   : > { %v1790_v5 = vadd.f32 %v2289_v2, %v3458_v6  ;;  %v1819_v45 = vmax.f32 %v1787_v1, 0.0 }
 0x2af   : > { %v1820_v35 = vmax.f32 %v1790_v5, 0.0  ;;  %v2290_v7 = vpop.f32.mrb[56].mxu1 }
 0x2b0   : > { %v2291_v46 = vpop.f32.mrb[57].mxu1 }
 0x2b1   : > { %v2292_v8 = vadd.f32 %v2291_v46, %v2290_v7  ;;  %v2293_v36 = vpop.f32.mrb[58].mxu1  ;;  %v1830_v47 = vpack.c.bf16 %v1820_v35, %v1819_v45 }
 0x2b2   : > { %v2294_v9 = vpop.f32.mrb[59].mxu1 }
 0x2b3   : > { %v1795_v10 = vadd.f32 %v2292_v8, %v3458_v6  ;;  %v2295_v11 = vadd.f32 %v2294_v9, %v2293_v36  ;;  %2343 = vmatmul.mubr.bf16.gmra.mrb[72].mxu1 %v1830_v47 }
 0x2b5   : > { %v1798_v12 = vadd.f32 %v2295_v11, %v3458_v6  ;;  %v1821_v37 = vmax.f32 %v1795_v10, 0.0 }
 0x2b7   : > { %v1822_v13 = vmax.f32 %v1798_v12, 0.0  ;;  %v2296_v48 = vpop.f32.mrb[60].mxu1 }
 0x2b8   : > { %v2297_v14 = vpop.f32.mrb[61].mxu1 }
 0x2b9   : > { %v2298_v15 = vadd.f32 %v2297_v14, %v2296_v48  ;;  %v2299_v38 = vpop.f32.mrb[62].mxu1  ;;  %v1831_v49 = vpack.c.bf16 %v1822_v13, %v1821_v37 }
 0x2ba   : > { %v2300_v16 = vpop.f32.mrb[63].mxu1 }
 0x2bb   : > { %v1803_v17 = vadd.f32 %v2298_v15, %v3458_v6  ;;  %v2301_v18 = vadd.f32 %v2300_v16, %v2299_v38  ;;  %2346 = vmatprep.mubr.bf16.mxu1 %v1831_v49 }
 0x2bd   : > { %v1806_v50 = vadd.f32 %v2301_v18, %v3458_v6  ;;  %v1823_v39 = vmax.f32 %v1803_v17, 0.0 }
 0x2bf   : > { %v1824_v19 = vmax.f32 %v1806_v50, 0.0 }
 0x2c1   : > { %v1832_v51 = vpack.c.bf16 %v1824_v19, %v1823_v39 }
 0x2c3   : > { %2347 = vmatmul.mubr.bf16.gmra.mrb[76].mxu1 %v1832_v51 }
 0x366   : > { %v2336_v21 = vpop.f32.mrb[64].mxu1 }
 0x367   : > { %v1947_v22 = vadd.f32 %v2336_v21, %v2223_v20  ;;  %v1938_v23 = vpop.f32.mrb[65].mxu1 }
 0x368   : > { %v1939_v24 = vadd.f32 %v2223_v20, %v1938_v23  ;;  %v2337_v25 = vpop.f32.mrb[66].mxu1 }
 0x369   : > { %2003 = vst [vmem:[%s3482_s19 + $0x10] sm:$0xff] %v1947_v22  ;;  %v1950_v6 = vadd.f32 %v2337_v25, %v2223_v20  ;;  %v1941_v52 = vpop.f32.mrb[67].mxu1 }
 0x36a   : > { %2001 = vst [vmem:[%s3482_s19] sm:$0xff] %v1939_v24  ;;  %v1942_v40 = vadd.f32 %v2223_v20, %v1941_v52 }
 0x36b   : > { %2004 = vst [vmem:[%s3482_s19 + $0x18] sm:$0xff] %v1950_v6 }
 0x36c   : > { %2002 = vst [vmem:[%s3482_s19 + $0x8] sm:$0xff] %v1942_v40 }
 0x376   : > { %v2340_v26 = vpop.f32.mrb[68].mxu1 }
 0x377   : > { %v1963_v27 = vadd.f32 %v2340_v26, %v2223_v20  ;;  %v1954_v53 = vpop.f32.mrb[69].mxu1 }
 0x378   : > { %v1955_v28 = vadd.f32 %v2223_v20, %v1954_v53  ;;  %v2341_v41 = vpop.f32.mrb[70].mxu1 }
 0x379   : > { %2007 = vst [vmem:[%s3482_s19 + $0x30] sm:$0xff] %v1963_v27  ;;  %v1966_v29 = vadd.f32 %v2341_v41, %v2223_v20  ;;  %v1957_v54 = vpop.f32.mrb[71].mxu1 }
 0x37a   : > { %2005 = vst [vmem:[%s3482_s19 + $0x20] sm:$0xff] %v1955_v28  ;;  %v1958_v30 = vadd.f32 %v2223_v20, %v1957_v54 }
 0x37b   : > { %2008 = vst [vmem:[%s3482_s19 + $0x38] sm:$0xff] %v1966_v29 }
 0x37c   : > { %2006 = vst [vmem:[%s3482_s19 + $0x28] sm:$0xff] %v1958_v30 }
 0x386   : > { %v2344_v31 = vpop.f32.mrb[72].mxu1 }
 0x387   : > { %v1979_v55 = vadd.f32 %v2344_v31, %v2223_v20  ;;  %v1970_v42 = vpop.f32.mrb[73].mxu1 }
 0x388   : > { %v1971_v56 = vadd.f32 %v2223_v20, %v1970_v42  ;;  %v2345_v32 = vpop.f32.mrb[74].mxu1 }
 0x389   : > { %2011 = vst [vmem:[%s3482_s19 + $0x50] sm:$0xff] %v1979_v55  ;;  %v1982_v43 = vadd.f32 %v2345_v32, %v2223_v20  ;;  %v1973_v61 = vpop.f32.mrb[75].mxu1 }
 0x38a   : > { %2009 = vst [vmem:[%s3482_s19 + $0x40] sm:$0xff] %v1971_v56  ;;  %v1974_v62 = vadd.f32 %v2223_v20, %v1973_v61 }
 0x38b   : > { %2012 = vst [vmem:[%s3482_s19 + $0x58] sm:$0xff] %v1982_v43 }
 0x38c   : > { %2010 = vst [vmem:[%s3482_s19 + $0x48] sm:$0xff] %v1974_v62 }
 0x396   : > { %v2348_v57 = vpop.f32.mrb[76].mxu1 }
 0x397   : > { %v1995_v33 = vadd.f32 %v2348_v57, %v2223_v20  ;;  %v1986_v63 = vpop.f32.mrb[77].mxu1 }
 0x398   : > { %v1987_v34 = vadd.f32 %v2223_v20, %v1986_v63  ;;  %v2349_v58 = vpop.f32.mrb[78].mxu1 }
 0x399   : > { %2015 = vst [vmem:[%s3482_s19 + $0x70] sm:$0xff] %v1995_v33  ;;  %v1998_v0 = vadd.f32 %v2349_v58, %v2223_v20  ;;  %v1989_v44 = vpop.f32.mrb[79].mxu1 }
 0x39a   : > { %2013 = vst [vmem:[%s3482_s19 + $0x60] sm:$0xff] %v1987_v34  ;;  %v1990_v3 = vadd.f32 %v2223_v20, %v1989_v44 }
 0x39b   : > { %2016 = vst [vmem:[%s3482_s19 + $0x78] sm:$0xff] %v1998_v0 }
 0x39c   : > { %2014 = vst [vmem:[%s3482_s19 + $0x68] sm:$0xff] %v1990_v3 }
 0x39d   : > { %2705 = shalt.err (!%p2702_p3)
}
 0x39e   : > { %s2706_s15 = scalar_lea.hbm %s3502_s29, 2048  ;;  %s2710_s18 = scalar_lea.hbm %s3559_s7, 8192 }
 0x39f   : > { %p2707_p4 = scmp.ne.s32.totalorder %s3502_s29, %s2706_s15  ;;  %p2711_p9 = scmp.lt.u32.totalorder %s3502_s29, %s3559_s7 }
 0x3a0   : > { %p2712_p10 = scmp.lt.u32.totalorder %s2710_s18, %s2706_s15  ;;  %p2714_p12 = scmp.lt.u32.totalorder %s2706_s15, %s3502_s29 }
 0x3a1   : > { %p2708_p7 = pnand %p2707_p4, %p2838_p5 }
 0x3a2   : > { %p2713_p11 = por %p2712_p10, %p2711_p9 }
 0x3a3   : > { %p2709_p8 = pneg %p2708_p7 }
 0x3a4   : > { %p2715_p13 = por %p2714_p12, %p2713_p11 }
 0x3a6   : > { %p2716_p0 = pnand %p2715_p13, %p2709_p8 }
 0x3a8   : > { %2719 = shalt.err (!%p2716_p0)
}
 0x3a9   : > { %s2758_s23 = smov 128   ;;  %s2759_s9 = smov 8  }
 0x3aa   : > { %2479 = dma.vmem_to_hbm [thread:$0]  (%p2838_p5), %s3504_s22, 2048, %s3502_s29, %s3511_s28, %s2758_s23, %s2758_s23, %s2759_s9  }
 0x3ab PF: > { %p2485_p1 = scmp.ge.s32.totalorder %s2754_s27, 2  ;;  %s2046_s8 = sand.u32 1, %s2742_s24  }
 0x3ac   : > { %s2047_s13 = scalar_lea.sflag [#allocation3], %s2046_s8 }
 0x3ad   : > { %p2482_p2 = pnand %p2485_p1, %p2842_p6 }
 0x3af   : > { %2737 = dma.done.wait (!%p2482_p2), %s2047_s13, 2048  }
 0x3b0   : > { %2739 = vsyncadd (!%p2482_p2), %s2047_s13, 4294965248  ;;  %p17_p3 = scmp.ge.s32.totalorder %s2825_s30, 6   ;;  %s3562_s24 = smov %s2746_s25 }
 0x3b1   : > { %s3563_s25 = smov %s2750_s26  ;;  %s3564_s26 = smov %s2836_s10 }
 0x3b2   : > { %s3565_s27 = smov %s2825_s30  ;;  %19 = sbr.rel (!%p17_p3) target bundleno = 3 (0x3), region = 83 }
 0x3b9   :  { %2052 = vsyncpa [#allocation3], 1 }
 0x3ba   :  { %2054 = vsyncpa [#allocation3 + $0x1], 1 }

</bundles_post_ra>
